<compile_context>
chip_gen: v5e
topology: v5e:2x2
jax: 0.10.0
libtpu: 0.0.40
codegen_flags: <defaults>
</compile_context>

<pallas_src>
import math
import functools

import jax
import jax.numpy as jnp
from jax import lax
from jax.experimental import pallas as pl
from jax.experimental.pallas import tpu as pltpu


def _round_up(x, m):
    return (x + m - 1) // m * m


# ----------------------------------------------------------------------------
# Kernel 1: dense(H->H) + gelu (erf, exact) + LayerNorm over last axis
#   x_ref: (tm, H)          w_ref: (H, H) [out, in] (PyTorch layout)
#   b/gamma/beta: (1, H)    o_ref: (tm, H) bf16
# ----------------------------------------------------------------------------
def _transform_kernel(x_ref, w_ref, b_ref, gamma_ref, beta_ref, o_ref, *, eps):
    x = x_ref[...].astype(jnp.bfloat16)
    w = w_ref[...].astype(jnp.bfloat16)
    # Contract the last ("in") dim of both operands: x @ w^T without a transpose.
    h = lax.dot_general(x, w, (((1,), (1,)), ((), ())),
                        preferred_element_type=jnp.float32)
    h = h + b_ref[...].astype(jnp.float32)

    # exact (erf-based) gelu in f32, matching HF ACT2FN["gelu"]
    h = 0.5 * h * (1.0 + lax.erf(h * (1.0 / math.sqrt(2.0))))

    # LayerNorm over the hidden axis (biased variance, like torch.nn.LayerNorm),
    # kept in f32 (v5e VPU/EUP have no bf16 path).
    mean = jnp.mean(h, axis=-1, keepdims=True)
    var = jnp.mean((h - mean) * (h - mean), axis=-1, keepdims=True)
    hn = (h - mean) * lax.rsqrt(var + eps)
    out = hn * gamma_ref[...].astype(jnp.float32) + beta_ref[...].astype(jnp.float32)

    o_ref[...] = out.astype(o_ref.dtype)


# ----------------------------------------------------------------------------
# Kernel 2: decoder matmul (H -> V) + bias, weight-stationary over token tiles
#   h_ref: (tm, H) bf16   w_ref: (tn, H) bf16 [out, in]   b_ref: (1, tn) f32
# ----------------------------------------------------------------------------
def _decoder_kernel(h_ref, w_ref, b_ref, o_ref):
    acc = lax.dot_general(h_ref[...].astype(jnp.bfloat16),
                          w_ref[...].astype(jnp.bfloat16),
                          (((1,), (1,)), ((), ())),
                          preferred_element_type=jnp.float32)
    o_ref[...] = (acc + b_ref[...].astype(jnp.float32)).astype(o_ref.dtype)


# ----------------------------------------------------------------------------
# Wrapper
# ----------------------------------------------------------------------------
def roberta_lm_prediction_head(hidden_states, params, *, eps=1e-5,
                               tm_max=256, tn_max=512):
    """hidden_states: [B, S, H].  params hold PyTorch-layout ([out, in]) weights.
    Returns logits [B, S, V] in float32."""
    B, S, H = hidden_states.shape
    V = params["decoder_w"].shape[0]
    T = B * S

    # Tile sizes: large token/vocab tiles for MXU utilisation + lane-dense stores.
    tm = min(tm_max, _round_up(T, 128))
    tn = min(tn_max, _round_up(V, 128))
    T_pad = _round_up(T, tm)
    V_pad = _round_up(V, tn)

    x = hidden_states.reshape(T, H)
    if T_pad != T:
        x = jnp.pad(x, ((0, T_pad - T), (0, 0)))

    # Weights stay in PyTorch [out, in] layout (no transpose materialisation).
    # Matmul operands go to the MXU in bf16; accumulation stays f32.
    w_dense = params["dense_w"].astype(jnp.bfloat16)                 # (H, H)
    b_dense = params["dense_b"].astype(jnp.float32).reshape(1, H)
    gamma = params["ln_gamma"].astype(jnp.float32).reshape(1, H)
    beta = params["ln_beta"].astype(jnp.float32).reshape(1, H)

    w_dec = params["decoder_w"]                                       # (V, H)
    b_dec = params["decoder_b"]
    if V_pad != V:
        w_dec = jnp.pad(w_dec, ((0, V_pad - V), (0, 0)))
        b_dec = jnp.pad(b_dec, ((0, V_pad - V),))
    w_dec = w_dec.astype(jnp.bfloat16)
    b_dec = b_dec.astype(jnp.float32).reshape(1, V_pad)

    # ---- stage 1: fused dense + gelu + layernorm, tiled over tokens ----
    # (Constant-index operands could be single-buffered via pipeline_mode=
    #  pl.Buffered(1) to save VMEM; omitted for runtime portability.)
    transform = pl.pallas_call(
        functools.partial(_transform_kernel, eps=eps),
        out_shape=jax.ShapeDtypeStruct((T_pad, H), jnp.bfloat16),
        grid_spec=pltpu.PrefetchScalarGridSpec(
            num_scalar_prefetch=0,
            grid=(T_pad // tm,),
            in_specs=[
                pl.BlockSpec((tm, H), lambda i: (i, 0)),   # x tile
                pl.BlockSpec((H, H), lambda i: (0, 0)),    # dense weight (full, [out,in])
                pl.BlockSpec((1, H), lambda i: (0, 0)),    # dense bias
                pl.BlockSpec((1, H), lambda i: (0, 0)),    # LN gamma
                pl.BlockSpec((1, H), lambda i: (0, 0)),    # LN beta
            ],
            out_specs=pl.BlockSpec((tm, H), lambda i: (i, 0)),
        ),
        compiler_params=pltpu.CompilerParams(
            dimension_semantics=("parallel",)),
    )
    h = transform(x, w_dense, b_dense, gamma, beta)

    # ---- stage 2: decoder matmul + bias, weight-stationary ----
    # Grid = (vocab, token) with the token axis innermost: each (tn, H) weight slab
    # stays VMEM-resident across all token tiles, so the decoder weight (the largest
    # operand) is streamed from HBM exactly once.
    decode = pl.pallas_call(
        _decoder_kernel,
        out_shape=jax.ShapeDtypeStruct((T_pad, V_pad), jnp.float32),
        grid_spec=pltpu.PrefetchScalarGridSpec(
            num_scalar_prefetch=0,
            grid=(V_pad // tn, T_pad // tm),
            in_specs=[
                pl.BlockSpec((tm, H), lambda j, i: (i, 0)),   # transformed hidden (bf16)
                pl.BlockSpec((tn, H), lambda j, i: (j, 0)),   # decoder weight slab [out,in]
                pl.BlockSpec((1, tn), lambda j, i: (0, j)),   # vocab bias slab
            ],
            out_specs=pl.BlockSpec((tm, tn), lambda j, i: (i, j)),
        ),
        compiler_params=pltpu.CompilerParams(
            dimension_semantics=("parallel", "parallel")),
    )
    logits = decode(h, w_dec, b_dec)

    if T_pad != T or V_pad != V:
        logits = logits[:T, :V]
    return logits.reshape(B, S, V)


# ----------------------------------------------------------------------------
# Pure-JAX reference (for correctness check); uses the same (bf16) weights.
# ----------------------------------------------------------------------------
def _reference(hidden_states, params, eps=1e-5):
    x = hidden_states.astype(jnp.float32)
    wd = params["dense_w"].astype(jnp.float32)             # [out, in]
    h = x @ wd.T + params["dense_b"].astype(jnp.float32)
    h = 0.5 * h * (1.0 + lax.erf(h * (1.0 / math.sqrt(2.0))))
    mean = jnp.mean(h, axis=-1, keepdims=True)
    var = jnp.mean((h - mean) ** 2, axis=-1, keepdims=True)
    h = (h - mean) / jnp.sqrt(var + eps)
    h = h * params["ln_gamma"].astype(jnp.float32) + params["ln_beta"].astype(jnp.float32)
    wdec = params["decoder_w"].astype(jnp.float32)         # [V, H]
    return h @ wdec.T + params["decoder_b"].astype(jnp.float32)


if __name__ == "__main__":
    # Small config consistent with the module: batch=2, seq=8, hidden=128, vocab=256.
    B, S, H, V = 2, 8, 128, 256
    eps = 1e-5

    key = jax.random.PRNGKey(0)
    k_x, k_dw, k_db, k_g, k_bt, k_decw = jax.random.split(key, 6)

    hidden_states = jax.random.normal(k_x, (B, S, H), dtype=jnp.float32)

    params = {
        # Weights stored bf16 (what the kernels stream); biases/LN params f32.
        "dense_w":   (jax.random.normal(k_dw, (H, H), dtype=jnp.float32) * 0.05
                      ).astype(jnp.bfloat16),                                   # [out, in]
        "dense_b":   jax.random.normal(k_db, (H,), dtype=jnp.float32) * 0.05,
        "ln_gamma":  1.0 + 0.05 * jax.random.normal(k_g, (H,), dtype=jnp.float32),
        "ln_beta":   0.05 * jax.random.normal(k_bt, (H,), dtype=jnp.float32),
        "decoder_w": (jax.random.normal(k_decw, (V, H), dtype=jnp.float32) * 0.05
                      ).astype(jnp.bfloat16),                                   # [out, in]
        "decoder_b": jnp.zeros((V,), dtype=jnp.float32),  # nn.Parameter(torch.zeros(vocab))
    }

    logits = roberta_lm_prediction_head(hidden_states, params, eps=eps)
    logits = jax.block_until_ready(logits)

    ref = _reference(hidden_states, params, eps=eps)
    assert logits.shape == (B, S, V)
    max_err = float(jnp.max(jnp.abs(logits - ref)))
    # bf16 matmul inputs with f32 accumulation: tolerance loosened accordingly.
    assert jnp.allclose(logits, ref, atol=2e-2, rtol=2e-2), f"mismatch vs reference (max_err={max_err})"

    print("KERNEL_OK")
</pallas_src>

<mosaic_0001>
module attributes {stable_mosaic.version = 11 : i64} {
  func.func @_transform_kernel(%arg0: i32, %arg1: memref<128x128xf32, #tpu.memory_space<vmem>>, %arg2: memref<128x128xbf16, #tpu.memory_space<vmem>>, %arg3: memref<1x128xf32, #tpu.memory_space<vmem>>, %arg4: memref<1x128xf32, #tpu.memory_space<vmem>>, %arg5: memref<1x128xf32, #tpu.memory_space<vmem>>, %arg6: memref<128x128xbf16, #tpu.memory_space<vmem>>) attributes {dimension_semantics = [#tpu.dimension_semantics<parallel>], iteration_bounds = array<i64: 1>, scalar_prefetch = 0 : i64, scratch_operands = 0 : i64, tpu.core_type = #tpu.core_type<tc>, window_params = [{transform_indices = @transform_0, window_bounds = array<i64: 128, 128>}, {pipeline_mode = #tpu.pipeline_mode<synchronous>, transform_indices = @transform_1, window_bounds = array<i64: 128, 128>}, {pipeline_mode = #tpu.pipeline_mode<synchronous>, transform_indices = @transform_2, window_bounds = array<i64: 1, 128>}, {pipeline_mode = #tpu.pipeline_mode<synchronous>, transform_indices = @transform_3, window_bounds = array<i64: 1, 128>}, {pipeline_mode = #tpu.pipeline_mode<synchronous>, transform_indices = @transform_4, window_bounds = array<i64: 1, 128>}, {transform_indices = @transform_5, window_bounds = array<i64: 128, 128>}]} {
    %c0 = arith.constant 0 : index
    %c0_0 = arith.constant 0 : index
    %0 = vector.load %arg1[%c0, %c0_0] : memref<128x128xf32, #tpu.memory_space<vmem>>, vector<128x128xf32>
    %1 = arith.truncf %0 : vector<128x128xf32> to vector<128x128xbf16>
    %c0_1 = arith.constant 0 : index
    %c0_2 = arith.constant 0 : index
    %2 = vector.load %arg2[%c0_1, %c0_2] : memref<128x128xbf16, #tpu.memory_space<vmem>>, vector<128x128xbf16>
    %cst = arith.constant dense<0.000000e+00> : vector<128x128xf32>
    %3 = tpu.matmul %1, %2, %cst {dimension_numbers = #tpu.dot_dimension_numbers<[1], [1], [0], [0], [0, 0, 1, 0], [], []>} : vector<128x128xbf16>, vector<128x128xbf16>, vector<128x128xf32> -> vector<128x128xf32>
    %c0_3 = arith.constant 0 : index
    %c0_4 = arith.constant 0 : index
    %4 = vector.load %arg3[%c0_3, %c0_4] : memref<1x128xf32, #tpu.memory_space<vmem>>, vector<1x128xf32>
    %5 = vector.broadcast %4 : vector<1x128xf32> to vector<128x128xf32>
    %6 = arith.addf %3, %5 : vector<128x128xf32>
    %cst_5 = arith.constant 5.000000e-01 : f32
    %7 = vector.broadcast %cst_5 : f32 to vector<128x128xf32>
    %8 = arith.mulf %7, %6 : vector<128x128xf32>
    %cst_6 = arith.constant 0.707106769 : f32
    %9 = vector.broadcast %cst_6 : f32 to vector<128x128xf32>
    %10 = arith.mulf %6, %9 : vector<128x128xf32>
    %11 = math.erf %10 : vector<128x128xf32>
    %cst_7 = arith.constant 1.000000e+00 : f32
    %12 = vector.broadcast %cst_7 : f32 to vector<128x128xf32>
    %13 = arith.addf %12, %11 : vector<128x128xf32>
    %14 = arith.mulf %8, %13 : vector<128x128xf32>
    %cst_8 = arith.constant dense<0.000000e+00> : vector<128xf32>
    %15 = vector.multi_reduction <add>, %14, %cst_8 [1] : vector<128x128xf32> to vector<128xf32>
    %16 = vector.shape_cast %15 : vector<128xf32> to vector<128x1xf32>
    %cst_9 = arith.constant 1.280000e+02 : f32
    %17 = vector.broadcast %cst_9 : f32 to vector<128x1xf32>
    %18 = arith.divf %16, %17 : vector<128x1xf32>
    %19 = vector.broadcast %18 : vector<128x1xf32> to vector<128x128xf32>
    %20 = arith.subf %14, %19 : vector<128x128xf32>
    %21 = vector.broadcast %18 : vector<128x1xf32> to vector<128x128xf32>
    %22 = arith.subf %14, %21 : vector<128x128xf32>
    %23 = arith.mulf %20, %22 : vector<128x128xf32>
    %cst_10 = arith.constant dense<0.000000e+00> : vector<128xf32>
    %24 = vector.multi_reduction <add>, %23, %cst_10 [1] : vector<128x128xf32> to vector<128xf32>
    %25 = vector.shape_cast %24 : vector<128xf32> to vector<128x1xf32>
    %cst_11 = arith.constant 1.280000e+02 : f32
    %26 = vector.broadcast %cst_11 : f32 to vector<128x1xf32>
    %27 = arith.divf %25, %26 : vector<128x1xf32>
    %28 = vector.broadcast %18 : vector<128x1xf32> to vector<128x128xf32>
    %29 = arith.subf %14, %28 : vector<128x128xf32>
    %cst_12 = arith.constant 9.99999974E-6 : f32
    %30 = vector.broadcast %cst_12 : f32 to vector<128x1xf32>
    %31 = arith.addf %27, %30 : vector<128x1xf32>
    %32 = math.rsqrt %31 : vector<128x1xf32>
    %33 = vector.broadcast %32 : vector<128x1xf32> to vector<128x128xf32>
    %34 = arith.mulf %29, %33 : vector<128x128xf32>
    %c0_13 = arith.constant 0 : index
    %c0_14 = arith.constant 0 : index
    %35 = vector.load %arg4[%c0_13, %c0_14] : memref<1x128xf32, #tpu.memory_space<vmem>>, vector<1x128xf32>
    %36 = vector.broadcast %35 : vector<1x128xf32> to vector<128x128xf32>
    %37 = arith.mulf %34, %36 : vector<128x128xf32>
    %c0_15 = arith.constant 0 : index
    %c0_16 = arith.constant 0 : index
    %38 = vector.load %arg5[%c0_15, %c0_16] : memref<1x128xf32, #tpu.memory_space<vmem>>, vector<1x128xf32>
    %39 = vector.broadcast %38 : vector<1x128xf32> to vector<128x128xf32>
    %40 = arith.addf %37, %39 : vector<128x128xf32>
    %41 = arith.truncf %40 : vector<128x128xf32> to vector<128x128xbf16>
    %c0_17 = arith.constant 0 : index
    %c0_18 = arith.constant 0 : index
    %42 = vector.load %arg6[%c0_17, %c0_18] : memref<128x128xbf16, #tpu.memory_space<vmem>>, vector<128x128xbf16>
    tpu.vector_store %arg6[%c0_17, %c0_18], %41 {strides = array<i32>} : memref<128x128xbf16, #tpu.memory_space<vmem>>, vector<128x128xbf16>,
    return
  }
  func.func @transform_0(%arg0: i32) -> (i32, i32) {
    %c0_i32 = arith.constant 0 : i32
    %c0_i32_0 = arith.constant 0 : i32
    return %arg0, %c0_i32 : i32, i32
  }
  func.func @transform_1(%arg0: i32) -> (i32, i32) {
    %c0_i32 = arith.constant 0 : i32
    %c0_i32_0 = arith.constant 0 : i32
    %c0_i32_1 = arith.constant 0 : i32
    return %c0_i32, %c0_i32_0 : i32, i32
  }
  func.func @transform_2(%arg0: i32) -> (i32, i32) {
    %c0_i32 = arith.constant 0 : i32
    %c0_i32_0 = arith.constant 0 : i32
    %c0_i32_1 = arith.constant 0 : i32
    return %c0_i32, %c0_i32_0 : i32, i32
  }
  func.func @transform_3(%arg0: i32) -> (i32, i32) {
    %c0_i32 = arith.constant 0 : i32
    %c0_i32_0 = arith.constant 0 : i32
    %c0_i32_1 = arith.constant 0 : i32
    return %c0_i32, %c0_i32_0 : i32, i32
  }
  func.func @transform_4(%arg0: i32) -> (i32, i32) {
    %c0_i32 = arith.constant 0 : i32
    %c0_i32_0 = arith.constant 0 : i32
    %c0_i32_1 = arith.constant 0 : i32
    return %c0_i32, %c0_i32_0 : i32, i32
  }
  func.func @transform_5(%arg0: i32) -> (i32, i32) {
    %c0_i32 = arith.constant 0 : i32
    %c0_i32_0 = arith.constant 0 : i32
    return %arg0, %c0_i32 : i32, i32
  }
}

</mosaic_0001>

<bundles_post_ra>
// kernel: tpu_custom_call.1
= control target key start
LH: loop header
LB: loop body
LE: loop exit
PB: predicated region body
PF: predicated region fallthrough
CT: control target
= control target key end

     0   :  { %10 = vsyncpa [#allocation3], 0  ;;  %s2561_s0 = inlined_call_operand.hbm [shape: f32[128,128], index: 0, kind: input, shape index: {}]   ;;  %s2562_s1 = inlined_call_operand.hbm [shape: bf16[128,128], index: 1, kind: input, shape index: {}]   ;;  %s2563_s2 = inlined_call_operand.vmem [shape: f32[1,128], index: 2, kind: input, shape index: {}]   ;;  %s2564_s3 = inlined_call_operand.vmem [shape: f32[1,128], index: 3, kind: input, shape index: {}]   ;;  %s2565_s4 = inlined_call_operand.vmem [shape: f32[1,128], index: 4, kind: input, shape index: {}]   ;;  %s2566_s5 = inlined_call_operand.hbm [shape: bf16[128,128], index: 5, kind: output, shape index: {}]  }
   0x1   :  { %11 = vsyncpa [#allocation6], 0 }
   0x2   :  { %12 = vsyncpa [#allocation4], 0  ;;  %s17_s20 = sshll.u32 %s2561_s0, 4  ;;  %s1599_s21 = smov [#allocation2]   ;;  %s18_s20 = int_to_ptr.hbm [resolvable:$true] %s17_s20 }
   0x3   :  { %s19_s22 = sshll.u32 %s1599_s21, 4  ;;  %s30_s25 = sshll.u32 %s2562_s1, 4  ;;  %s20_s22 = int_to_ptr.vmem [resolvable:$true] %s19_s22  ;;  %s31_s25 = int_to_ptr.hbm [resolvable:$true] %s30_s25 }
   0x4   :  { %s1600_s26 = smov 128   ;;  %s1601_s27 = smov 8  }
   0x5   :  { %25 = dma.hbm_to_vmem [thread:$0]  %s18_s20, 2048, %s20_s22, [#allocation3], %s1600_s26, %s1600_s26, %s1601_s27  }
   0x6   :  { %s1602_s28 = smov [#allocation5]   ;;  %s1603_s30 = smov 64  }
   0x7   :  { %s32_s29 = sshll.u32 %s1602_s28, 4  ;;  %s1604_s6 = smov 4   ;;  %s33_s29 = int_to_ptr.vmem [resolvable:$true] %s32_s29 }
   0x8   :  { %38 = dma.hbm_to_vmem [thread:$0]  %s31_s25, 1024, %s33_s29, [#allocation6], %s1603_s30, %s1603_s30, %s1604_s6  }
   0x9   :  { %1593 = dma.done.wait [#allocation3], 2048  }
   0xa   :  { %1594 = vsyncadd [#allocation3], 4294965248 }
   0xb   :  { %1595 = dma.done.wait [#allocation6], 1024  }
   0xc   :  { %1596 = vsyncadd [#allocation6], 4294966272  ;;  %v1372_v0 = vld [vmem:[#allocation5 + $0x38] sm:$0xff]  ;;  %v1371_v1 = vld [vmem:[#allocation5 + $0x30] sm:$0xff]  ;;  %s1303_s12 = sshll.u32 %s2566_s5, 4  ;;  %s1304_s12 = int_to_ptr.hbm [resolvable:$true] %s1303_s12 }
   0xd   :  { %145 = vmatpush.bf16.xpose.msra.mxu0 %v1372_v0  ;;  %1420 = vmatpush.bf16.xpose.msra.mxu1 %v1372_v0  ;;  %v1370_v2 = vld [vmem:[#allocation5 + $0x28] sm:$0xff]  ;;  %v1369_v3 = vld [vmem:[#allocation5 + $0x20] sm:$0xff]  ;;  %v1368_v4 = vld [vmem:[#allocation5 + $0x18] sm:$0xff] }
   0xe   :  { %1421 = vmatpush.bf16.xpose.msra.mxu2 %v1372_v0  ;;  %1422 = vmatpush.bf16.xpose.msra.mxu3 %v1372_v0  ;;  %v1367_v5 = vld [vmem:[#allocation5 + $0x10] sm:$0xff]  ;;  %v1366_v6 = vld [vmem:[#allocation5 + $0x8] sm:$0xff]  ;;  %v1365_v7 = vld [vmem:[#allocation5] sm:$0xff] }
   0xf   :  { %v53_v8 = vld [vmem:[#allocation2] sm:$0xff]  ;;  %v54_v9 = vld [vmem:[#allocation2 + $0x8] sm:$0xff]  ;;  %v55_v20 = vld [vmem:[#allocation2 + $0x10] sm:$0xff] }
  0x10   :  { %v57_v10 = vld [vmem:[#allocation2 + $0x20] sm:$0xff]  ;;  %v58_v11 = vld [vmem:[#allocation2 + $0x28] sm:$0xff]  ;;  %v69_v16 = vpack.c.bf16 %v54_v9, %v53_v8  ;;  %v56_v21 = vld [vmem:[#allocation2 + $0x18] sm:$0xff] }
  0x11   :  { %v61_v12 = vld [vmem:[#allocation2 + $0x40] sm:$0xff]  ;;  %v62_v13 = vld [vmem:[#allocation2 + $0x48] sm:$0xff]  ;;  %v71_v17 = vpack.c.bf16 %v58_v11, %v57_v10  ;;  %v59_v22 = vld [vmem:[#allocation2 + $0x30] sm:$0xff]  ;;  %v70_v28 = vpack.c.bf16 %v56_v21, %v55_v20 }
  0x12   :  { %v65_v14 = vld [vmem:[#allocation2 + $0x60] sm:$0xff]  ;;  %v66_v15 = vld [vmem:[#allocation2 + $0x68] sm:$0xff]  ;;  %v73_v18 = vpack.c.bf16 %v62_v13, %v61_v12  ;;  %v60_v23 = vld [vmem:[#allocation2 + $0x38] sm:$0xff] }
  0x13   :  { %v75_v19 = vpack.c.bf16 %v66_v15, %v65_v14  ;;  %v63_v24 = vld [vmem:[#allocation2 + $0x50] sm:$0xff]  ;;  %v64_v25 = vld [vmem:[#allocation2 + $0x58] sm:$0xff]  ;;  %v72_v29 = vpack.c.bf16 %v60_v23, %v59_v22  ;;  %v1649_v32 = vld [vmem:[%s2563_s2] ss:$0 sm:$0xff] }
  0x14   :  { %v67_v26 = vld [vmem:[#allocation2 + $0x70] sm:$0xff]  ;;  %v68_v27 = vld [vmem:[#allocation2 + $0x78] sm:$0xff]  ;;  %v74_v30 = vpack.c.bf16 %v64_v25, %v63_v24 }
  0x15   :  { %146 = vmatpush.bf16.xpose.msra.mxu0 %v1371_v1  ;;  %1423 = vmatpush.bf16.xpose.msra.mxu1 %v1371_v1  ;;  %v76_v31 = vpack.c.bf16 %v68_v27, %v67_v26 }
  0x16   :  { %1424 = vmatpush.bf16.xpose.msra.mxu2 %v1371_v1  ;;  %1425 = vmatpush.bf16.xpose.msra.mxu3 %v1371_v1 }
  0x1d   :  { %147 = vmatpush.bf16.xpose.msra.mxu0 %v1370_v2  ;;  %1426 = vmatpush.bf16.xpose.msra.mxu1 %v1370_v2 }
  0x1e   :  { %1427 = vmatpush.bf16.xpose.msra.mxu2 %v1370_v2  ;;  %1428 = vmatpush.bf16.xpose.msra.mxu3 %v1370_v2 }
  0x25   :  { %148 = vmatpush.bf16.xpose.msra.mxu0 %v1369_v3  ;;  %1429 = vmatpush.bf16.xpose.msra.mxu1 %v1369_v3 }
  0x26   :  { %1430 = vmatpush.bf16.xpose.msra.mxu2 %v1369_v3  ;;  %1431 = vmatpush.bf16.xpose.msra.mxu3 %v1369_v3 }
  0x2d   :  { %149 = vmatpush.bf16.xpose.msra.mxu0 %v1368_v4  ;;  %1432 = vmatpush.bf16.xpose.msra.mxu1 %v1368_v4 }
  0x2e   :  { %1433 = vmatpush.bf16.xpose.msra.mxu2 %v1368_v4  ;;  %1434 = vmatpush.bf16.xpose.msra.mxu3 %v1368_v4 }
  0x35   :  { %150 = vmatpush.bf16.xpose.msra.mxu0 %v1367_v5  ;;  %1435 = vmatpush.bf16.xpose.msra.mxu1 %v1367_v5 }
  0x36   :  { %1436 = vmatpush.bf16.xpose.msra.mxu2 %v1367_v5  ;;  %1437 = vmatpush.bf16.xpose.msra.mxu3 %v1367_v5 }
  0x3d   :  { %151 = vmatpush.bf16.xpose.msra.mxu0 %v1366_v6  ;;  %1438 = vmatpush.bf16.xpose.msra.mxu1 %v1366_v6 }
  0x3e   :  { %1439 = vmatpush.bf16.xpose.msra.mxu2 %v1366_v6  ;;  %1440 = vmatpush.bf16.xpose.msra.mxu3 %v1366_v6 }
  0x45   :  { %152 = vmatpush.bf16.xpose.msra.mxu0 %v1365_v7  ;;  %1441 = vmatpush.bf16.xpose.msra.mxu1 %v1365_v7 }
  0x46   :  { %1442 = vmatpush.bf16.xpose.msra.mxu2 %v1365_v7  ;;  %1443 = vmatpush.bf16.xpose.msra.mxu3 %v1365_v7 }
  0x4c   :  { %153 = vmatmul.bf16.vlgmr.msra.gmra.mxu0 %v69_v16  ;;  %163 = vmatmul.bf16.vlgmr.msra.gmra.mxu1 %v71_v17 }
  0x4d   :  { %173 = vmatmul.bf16.vlgmr.msra.gmra.mxu2 %v73_v18  ;;  %183 = vmatmul.bf16.vlgmr.msra.gmra.mxu3 %v75_v19 }
  0x5c   :  { %158 = vmatmul.bf16.gmra.mxu0 %v70_v28  ;;  %168 = vmatmul.bf16.gmra.mxu1 %v72_v29 }
  0x5d   :  { %178 = vmatmul.bf16.gmra.mxu2 %v74_v30  ;;  %188 = vmatmul.bf16.gmra.mxu3 %v76_v31 }
  0xc9   :  { %v154_v33 = vpop.f32.mrf.mxu0  ;;  %v164_v34 = vpop.f32.mrf.mxu1 }
  0xca   :  { %v155_v35 = vadd.f32 %v1649_v32, %v154_v33  ;;  %v1653_v36 = vadd.f32 %v1649_v32, %v164_v34 }
  0xcc   :  { %v1655_v37 = vmul.f32 0.70710677, %v155_v35  ;;  %v1658_v38 = vmul.f32 0.70710677, %v1653_v36 }
  0xce   :  { %v226_v39 = vmul.f32 %v1655_v37, %v1655_v37  ;;  %v386_v40 = vmul.f32 %v1658_v38, %v1658_v38 }
  0xd0   :  { %v1664_v41 = vmin.f32 %v226_v39, 16.0  ;;  %v1666_v42 = vmin.f32 %v386_v40, 16.0  ;;  %v174_v43 = vpop.f32.mrf.mxu2  ;;  %v184_v44 = vpop.f32.mrf.mxu3  ;;  %v1740_v39 = vmul.f32 0.5, %v155_v35 }
  0xd1   :  { %v1669_v45 = vadd.f32 %v1649_v32, %v174_v43  ;;  %v1672_v46 = vadd.f32 %v1649_v32, %v184_v44  ;;  %v156_v47 = vpop.f32.mrf.mxu0  ;;  %v166_v48 = vpop.f32.mrf.mxu1 }
  0xd2   :  { %v228_v49 = vmul.f32 2.1237322e-06, %v1664_v41  ;;  %v388_v50 = vmul.f32 2.1237322e-06, %v1666_v42  ;;  %v1677_v51 = vadd.f32 %v1649_v32, %v156_v47  ;;  %v1680_v52 = vadd.f32 %v1649_v32, %v166_v48 }
  0xd3   :  { %v1683_v53 = vmul.f32 0.70710677, %v1669_v45  ;;  %v1686_v54 = vmul.f32 0.70710677, %v1672_v46  ;;  %v1746_v48 = vmul.f32 0.5, %v1653_v36  ;;  %v1762_v36 = vmul.f32 0.5, %v1672_v46 }
  0xd4   :  { %v229_v55 = vadd.f32 0.00028619796, %v228_v49  ;;  %v389_v56 = vadd.f32 0.00028619796, %v388_v50  ;;  %v1691_v58 = vmul.f32 0.70710677, %v1677_v51 }
  0xd5   :  { %v546_v57 = vmul.f32 %v1683_v53, %v1683_v53  ;;  %v1694_v59 = vmul.f32 0.70710677, %v1680_v52  ;;  %v706_v62 = vmul.f32 %v1686_v54, %v1686_v54 }
  0xd6   :  { %v230_v60 = vmul.f32 %v229_v55, %v1664_v41  ;;  %v390_v63 = vmul.f32 %v389_v56, %v1666_v42  ;;  %v266_v0 = vmul.f32 %v1691_v58, %v1691_v58 }
  0xd7   :  { %v1697_v61 = vmin.f32 %v546_v57, 16.0  ;;  %v426_v2 = vmul.f32 %v1694_v59, %v1694_v59  ;;  %v1708_v7 = vmin.f32 %v706_v62, 16.0  ;;  %v1759_v62 = vmul.f32 0.5, %v1669_v45 }
  0xd8   :  { %v176_v1 = vpop.f32.mrf.mxu2  ;;  %v186_v4 = vpop.f32.mrf.mxu3  ;;  %v231_v5 = vadd.f32 0.0036580483, %v230_v60  ;;  %v391_v8 = vadd.f32 0.0036580483, %v390_v63  ;;  %v1710_v9 = vmin.f32 %v266_v0, 16.0 }
  0xd9   :  { %v177_v3 = vadd.f32 %v1649_v32, %v176_v1  ;;  %v548_v6 = vmul.f32 2.1237322e-06, %v1697_v61  ;;  %v1712_v10 = vmin.f32 %v426_v2, 16.0  ;;  %v1715_v11 = vadd.f32 %v1649_v32, %v186_v4  ;;  %v159_v21 = vpop.f32.mrf.mxu0  ;;  %v169_v34 = vpop.f32.mrf.mxu1 }
  0xda   :  { %v232_v13 = vmul.f32 %v231_v5, %v1664_v41  ;;  %v708_v15 = vmul.f32 2.1237322e-06, %v1708_v7  ;;  %v392_v16 = vmul.f32 %v391_v8, %v1666_v42  ;;  %v268_v17 = vmul.f32 2.1237322e-06, %v1710_v9 }
  0xdb   :  { %v1717_v12 = vmul.f32 0.70710677, %v177_v3  ;;  %v549_v14 = vadd.f32 0.00028619796, %v548_v6  ;;  %v428_v19 = vmul.f32 2.1237322e-06, %v1712_v10  ;;  %v1735_v29 = vadd.f32 %v1649_v32, %v159_v21 }
  0xdc   :  { %v1727_v20 = vmul.f32 0.70710677, %v1715_v11  ;;  %v233_v23 = vadd.f32 0.05243302, %v232_v13  ;;  %v709_v25 = vadd.f32 0.00028619796, %v708_v15  ;;  %v1753_v55 = vadd.f32 %v1649_v32, %v169_v34 }
  0xdd   :  { %v586_v18 = vmul.f32 %v1717_v12, %v1717_v12  ;;  %v550_v24 = vmul.f32 %v549_v14, %v1697_v61  ;;  %v393_v27 = vadd.f32 0.05243302, %v392_v16  ;;  %v269_v28 = vadd.f32 0.00028619796, %v268_v17 }
  0xde   :  { %v746_v26 = vmul.f32 %v1727_v20, %v1727_v20  ;;  %v429_v30 = vadd.f32 0.00028619796, %v428_v19  ;;  %v234_v40 = vmul.f32 %v233_v23, %v1664_v41  ;;  %v710_v44 = vmul.f32 %v709_v25, %v1708_v7  ;;  %2578 = vst [vmem:[#allocation11_spill] sm:$0xff] %v1753_v55 }
  0xdf   :  { %v1729_v22 = vmin.f32 %v586_v18, 16.0  ;;  %v551_v43 = vadd.f32 0.0036580483, %v550_v24  ;;  %v270_v49 = vmul.f32 %v269_v28, %v1710_v9  ;;  %v1750_v50 = vmul.f32 0.70710677, %v1735_v29 }
  0xe0   :  { %v1738_v33 = vmin.f32 %v746_v26, 16.0  ;;  %v394_v35 = vmul.f32 %v393_v27, %v1666_v42  ;;  %v430_v56 = vmul.f32 %v429_v30, %v1712_v10  ;;  %v399_v60 = vmul.f32 3.8918573e-05, %v1666_v42  ;;  %v179_v13 = vpop.f32.mrf.mxu2  ;;  %v189_v14 = vpop.f32.mrf.mxu3 }
  0xe1   :  { %v588_v31 = vmul.f32 2.1237322e-06, %v1729_v22  ;;  %v306_v0 = vmul.f32 %v1750_v50, %v1750_v50  ;;  %v235_v1 = vadd.f32 0.18741608, %v234_v40  ;;  %v552_v2 = vmul.f32 %v551_v43, %v1697_v61 }
  0xe2   :  { %v748_v47 = vmul.f32 2.1237322e-06, %v1738_v33  ;;  %v711_v4 = vadd.f32 0.0036580483, %v710_v44  ;;  %v1768_v5 = vmul.f32 0.5, %v1677_v51  ;;  %v1771_v8 = vmul.f32 0.5, %v1680_v52 }
  0xe3   :  { %v589_v57 = vadd.f32 0.00028619796, %v588_v31  ;;  %v271_v6 = vadd.f32 0.0036580483, %v270_v49  ;;  %v1773_v45 = vmin.f32 %v306_v0, 16.0  ;;  %v1781_v19 = vmul.f32 0.5, %v177_v3  ;;  %v161_v31 = vpop.f32.mrf.mxu0 }
  0xe4   :  { %v749_v63 = vadd.f32 0.00028619796, %v748_v47  ;;  %v1776_v46 = vmul.f32 0.70710677, %v1753_v55  ;;  %v395_v15 = vadd.f32 0.18741608, %v394_v35  ;;  %v712_v24 = vmul.f32 %v711_v4, %v1708_v7 }
  0xe5   :  { %v431_v16 = vadd.f32 0.0036580483, %v430_v56  ;;  %v590_v17 = vmul.f32 %v589_v57, %v1729_v22  ;;  %v1779_v18 = vadd.f32 0.001143296, %v399_v60  ;;  %v308_v52 = vmul.f32 2.1237322e-06, %v1773_v45 }
  0xe6   :  { %v750_v51 = vmul.f32 %v749_v63, %v1738_v33  ;;  %v466_v21 = vmul.f32 %v1776_v46, %v1776_v46  ;;  %v553_v23 = vadd.f32 0.05243302, %v552_v2  ;;  %v1789_v25 = vadd.f32 %v1649_v32, %v179_v13 }
  0xe7   :  { %v1792_v26 = vadd.f32 %v1649_v32, %v189_v14  ;;  %v236_v27 = vmul.f32 %v235_v1, %v1664_v41  ;;  %v272_v3 = vmul.f32 %v271_v6, %v1710_v9  ;;  %v309_v28 = vadd.f32 0.00028619796, %v308_v52 }
  0xe8   :  { %2579 = vst [vmem:[#allocation12_spill] sm:$0xff] %v1789_v25  ;;  %v1796_v30 = vmin.f32 %v466_v21, 16.0  ;;  %v396_v34 = vmul.f32 %v395_v15, %v1666_v42  ;;  %v432_v40 = vmul.f32 %v431_v16, %v1712_v10  ;;  %v591_v43 = vadd.f32 0.0036580483, %v590_v17 }
  0xe9   :  { %2580 = vst [vmem:[#allocation13_spill] sm:$0xff] %v1792_v26  ;;  %v1801_v44 = vmul.f32 0.70710677, %v1789_v25  ;;  %v751_v47 = vadd.f32 0.0036580483, %v750_v51  ;;  %v310_v49 = vmul.f32 %v309_v28, %v1773_v45  ;;  %v554_v57 = vmul.f32 %v553_v23, %v1697_v61  ;;  %v181_v23 = vpop.f32.mrf.mxu2 }
  0xea   :  { %v468_v35 = vmul.f32 2.1237322e-06, %v1796_v30  ;;  %v1806_v56 = vmul.f32 0.70710677, %v1792_v26  ;;  %v713_v60 = vadd.f32 0.05243302, %v712_v24  ;;  %v1812_v0 = vadd.f32 %v1649_v32, %v161_v31  ;;  %v171_v31 = vpop.f32.mrf.mxu1 }
  0xeb   :  { %v626_v63 = vmul.f32 %v1801_v44, %v1801_v44  ;;  %v273_v1 = vadd.f32 0.05243302, %v272_v3  ;;  %v311_v2 = vadd.f32 0.0036580483, %v310_v49  ;;  %v433_v13 = vadd.f32 0.05243302, %v432_v40 }
  0xec   :  { %2581 = vst [vmem:[#allocation14_spill] sm:$0xff] %v1806_v56  ;;  %v469_v4 = vadd.f32 0.00028619796, %v468_v35  ;;  %v786_v6 = vmul.f32 %v1806_v56, %v1806_v56  ;;  %v1817_v14 = vmul.f32 0.5, %v1715_v11  ;;  %v1822_v16 = vmul.f32 0.70710677, %v1812_v0 }
  0xed   :  { %2582 = vst [vmem:[#allocation15_spill] sm:$0xff] %v1812_v0  ;;  %v1819_v15 = vmin.f32 %v626_v63, 16.0  ;;  %v592_v17 = vmul.f32 %v591_v43, %v1729_v22  ;;  %v752_v51 = vmul.f32 %v751_v47, %v1738_v33  ;;  %v237_v24 = vadd.f32 1.1283791, %v236_v27 }
  0xee   :  { %2583 = vst [vmem:[#allocation16_spill] sm:$0xff] %v1822_v16  ;;  %v470_v52 = vmul.f32 %v469_v4, %v1796_v30  ;;  %v1827_v21 = vmin.f32 %v786_v6, 16.0  ;;  %v714_v3 = vmul.f32 %v713_v60, %v1708_v7  ;;  %v346_v28 = vmul.f32 %v1822_v16, %v1822_v16 }
  0xef   :  { %v628_v11 = vmul.f32 2.1237322e-06, %v1819_v15  ;;  %v397_v40 = vadd.f32 1.1283791, %v396_v34  ;;  %v555_v49 = vadd.f32 0.18741608, %v554_v57  ;;  %v312_v43 = vmul.f32 %v311_v2, %v1773_v45 }
  0xf0   :  { %v471_v35 = vadd.f32 0.0036580483, %v470_v52  ;;  %v274_v47 = vmul.f32 %v273_v1, %v1710_v9  ;;  %v788_v4 = vmul.f32 2.1237322e-06, %v1827_v21  ;;  %v1837_v27 = vadd.f32 %v1649_v32, %v181_v23 }
  0xf1   :  { %v629_v63 = vadd.f32 0.00028619796, %v628_v11  ;;  %v434_v60 = vmul.f32 %v433_v13, %v1712_v10  ;;  %v593_v6 = vadd.f32 0.05243302, %v592_v17  ;;  %v753_v0 = vadd.f32 0.05243302, %v752_v51  ;;  %v191_v17 = vpop.f32.mrf.mxu3 }
  0xf2   :  { %v1841_v16 = vadd.f32 %v1649_v32, %v171_v31  ;;  %v1844_v34 = vmul.f32 %v237_v24, %v1655_v37  ;;  %v715_v57 = vadd.f32 0.18741608, %v714_v3  ;;  %v472_v2 = vmul.f32 %v471_v35, %v1796_v30 }
  0xf3   :  { %v1847_v1 = vmin.f32 %v346_v28, 16.0  ;;  %v556_v52 = vmul.f32 %v555_v49, %v1697_v61  ;;  %v1851_v23 = vmul.f32 0.5, %v1735_v29  ;;  %v313_v11 = vadd.f32 0.05243302, %v312_v43 }
  0xf4   :  { %2584 = vst [vmem:[#allocation17_spill] sm:$0xff] %v1841_v16  ;;  %v630_v13 = vmul.f32 %v629_v63, %v1819_v15  ;;  %v1855_v51 = vmul.f32 %v397_v40, %v1658_v38  ;;  %v275_v31 = vadd.f32 0.18741608, %v274_v47  ;;  %v789_v37 = vadd.f32 0.00028619796, %v788_v4 }
  0xf5   :  { %v1858_v24 = vmul.f32 0.70710677, %v1837_v27  ;;  %v435_v3 = vadd.f32 0.18741608, %v434_v60  ;;  %v594_v28 = vmul.f32 %v593_v6, %v1729_v22  ;;  %v754_v49 = vmul.f32 %v753_v0, %v1738_v33 }
  0xf6   :  { %v1863_v29 = vmul.f32 0.70710677, %v1841_v16  ;;  %v473_v43 = vadd.f32 0.05243302, %v472_v2  ;;  %v348_v35 = vmul.f32 2.1237322e-06, %v1847_v1  ;;  %v1869_v40 = vadd.f32 %v1649_v32, %v191_v17 }
  0xf7   :  { %v666_v38 = vmul.f32 %v1858_v24, %v1858_v24  ;;  %v557_v47 = vadd.f32 1.1283791, %v556_v52  ;;  %v716_v63 = vmul.f32 %v715_v57, %v1708_v7  ;;  %v314_v4 = vmul.f32 %v313_v11, %v1773_v45 }
  0xf8   :  { %2585 = vst [vmem:[#allocation18_spill] sm:$0xff] %v1863_v29  ;;  %v631_v60 = vadd.f32 0.0036580483, %v630_v13  ;;  %v276_v0 = vmul.f32 %v275_v31, %v1710_v9  ;;  %v790_v6 = vmul.f32 %v789_v37, %v1827_v21  ;;  %v401_v2 = vmul.f32 %v1779_v18, %v1666_v42 }
  0xf9   :  { %2586 = vst [vmem:[#allocation19_spill] sm:$0xff] %v1869_v40  ;;  %v1875_v16 = vmin.f32 %v666_v38, 16.0  ;;  %v436_v56 = vmul.f32 %v435_v3, %v1712_v10  ;;  %v595_v26 = vadd.f32 0.18741608, %v594_v28  ;;  %v755_v32 = vadd.f32 0.18741608, %v754_v49 }
  0xfa   :  { %v506_v52 = vmul.f32 %v1863_v29, %v1863_v29  ;;  %v474_v57 = vmul.f32 %v473_v43, %v1796_v30  ;;  %v349_v11 = vadd.f32 0.00028619796, %v348_v35  ;;  %v1885_v17 = vmul.f32 0.70710677, %v1869_v40 }
  0xfb   :  { %v668_v13 = vmul.f32 2.1237322e-06, %v1875_v16  ;;  %v717_v31 = vadd.f32 1.1283791, %v716_v63  ;;  %v315_v37 = vadd.f32 0.18741608, %v314_v4  ;;  %v632_v38 = vmul.f32 %v631_v60, %v1819_v15 }
  0xfc   :  { %2587 = vst [vmem:[#allocation20_spill] sm:$0xff] %v1885_v17  ;;  %v402_v18 = vadd.f32 0.014752088, %v401_v2  ;;  %v1889_v3 = vmul.f32 %v557_v47, %v1683_v53  ;;  %v277_v28 = vadd.f32 1.1283791, %v276_v0  ;;  %v1891_v55 = vmin.f32 %v506_v52, 16.0 }
  0xfd   :  { %v791_v49 = vadd.f32 0.0036580483, %v790_v6  ;;  %v669_v25 = vadd.f32 0.00028619796, %v668_v13  ;;  %v437_v29 = vadd.f32 1.1283791, %v436_v56  ;;  %v826_v43 = vmul.f32 %v1885_v17, %v1885_v17 }
  0xfe   :  { %v403_v35 = vmul.f32 %v402_v18, %v1666_v42  ;;  %v596_v63 = vmul.f32 %v595_v26, %v1729_v22  ;;  %v756_v4 = vmul.f32 %v755_v32, %v1738_v33  ;;  %v475_v60 = vadd.f32 0.18741608, %v474_v57 }
  0xff   :  { %v350_v2 = vmul.f32 %v349_v11, %v1847_v1  ;;  %v316_v53 = vmul.f32 %v315_v37, %v1773_v45  ;;  %v633_v47 = vadd.f32 0.05243302, %v632_v38  ;;  %v239_v56 = vmul.f32 3.8918573e-05, %v1664_v41 }
 0x100   :  { %v404_v0 = vadd.f32 0.112945676, %v403_v35  ;;  %v1902_v6 = vmul.f32 %v717_v31, %v1686_v54  ;;  %v1905_v52 = vmul.f32 %v277_v28, %v1691_v58  ;;  %v792_v13 = vmul.f32 %v791_v49, %v1827_v21 }
 0x101   :  { %v670_v26 = vmul.f32 %v669_v25, %v1875_v16  ;;  %v1910_v32 = vmul.f32 %v437_v29, %v1694_v59  ;;  %v508_v57 = vmul.f32 2.1237322e-06, %v1891_v55  ;;  %v1913_v11 = vmin.f32 %v826_v43, 16.0 }
 0x102   :  { %v405_v37 = vmul.f32 %v404_v0, %v1666_v42  ;;  %v597_v38 = vadd.f32 1.1283791, %v596_v63  ;;  %v476_v54 = vmul.f32 %v475_v60, %v1796_v30  ;;  %v351_v31 = vadd.f32 0.0036580483, %v350_v2 }
 0x103   :  { %v240_v18 = vadd.f32 0.001143296, %v239_v56  ;;  %v757_v58 = vadd.f32 1.1283791, %v756_v4  ;;  %v317_v28 = vadd.f32 1.1283791, %v316_v53  ;;  %v634_v49 = vmul.f32 %v633_v47, %v1819_v15 }
 0x104   :  { %v406_v35 = vadd.f32 0.4994258, %v405_v37  ;;  %v793_v25 = vadd.f32 0.05243302, %v792_v13  ;;  %v671_v40 = vadd.f32 0.0036580483, %v670_v26  ;;  %v352_v4 = vmul.f32 %v351_v31, %v1847_v1 }
 0x105   :  { %v241_v59 = vmul.f32 %v240_v18, %v1664_v41  ;;  %v559_v29 = vmul.f32 3.8918573e-05, %v1697_v61  ;;  %v509_v43 = vadd.f32 0.00028619796, %v508_v57  ;;  %v828_v17 = vmul.f32 2.1237322e-06, %v1913_v11 }
 0x106   :  { %v407_v63 = vmul.f32 %v406_v35, %v1666_v42  ;;  %v719_v60 = vmul.f32 3.8918573e-05, %v1708_v7  ;;  %v477_v2 = vadd.f32 1.1283791, %v476_v54  ;;  %v1925_v47 = vmul.f32 %v597_v38, %v1717_v12 }
 0x107   :  { %v242_v53 = vadd.f32 0.014752088, %v241_v59  ;;  %v560_v0 = vadd.f32 0.001143296, %v559_v29  ;;  %v635_v56 = vadd.f32 0.18741608, %v634_v49  ;;  %v794_v57 = vmul.f32 %v793_v25, %v1827_v21 }
 0x108   :  { %v1927_v13 = vadd.f32 1.0, %v407_v63  ;;  %v720_v26 = vadd.f32 0.001143296, %v719_v60  ;;  %v672_v37 = vmul.f32 %v671_v40, %v1875_v16  ;;  %v1934_v54 = vmul.f32 %v757_v58, %v1727_v20 }
 0x109   :  { %v243_v42 = vmul.f32 %v242_v53, %v1664_v41  ;;  %v561_v18 = vmul.f32 %v560_v0, %v1697_v61  ;;  %v829_v31 = vadd.f32 0.00028619796, %v828_v17  ;;  %v759_v12 = vmul.f32 3.8918573e-05, %v1738_v33 }
 0x10a   :  { %1455 = vrcp.f32 %v1927_v13  ;;  %v353_v38 = vadd.f32 0.05243302, %v352_v4  ;;  %v510_v49 = vmul.f32 %v509_v43, %v1891_v55  ;;  %v1940_v35 = vmul.f32 0.5, %v1837_v27 }
 0x10b   :  { %v244_v25 = vadd.f32 0.112945676, %v243_v42  ;;  %v1943_v40 = vmul.f32 %v317_v28, %v1750_v50  ;;  %v636_v59 = vmul.f32 %v635_v56, %v1819_v15  ;;  %v562_v29 = vadd.f32 0.014752088, %v561_v18 }
 0x10c   :  { %v721_v20 = vmul.f32 %v720_v26, %v1708_v7  ;;  %v1948_v17 = vmul.f32 %v477_v2, %v1776_v46  ;;  %v1950_v58 = vadd.f32 0.18741608, %v794_v57  ;;  %v673_v63 = vadd.f32 0.05243302, %v672_v37 }
 0x10d   :  { %v245_v43 = vmul.f32 %v244_v25, %v1664_v41  ;;  %v830_v27 = vmul.f32 %v829_v31, %v1913_v11  ;;  %v563_v60 = vmul.f32 %v562_v29, %v1697_v61  ;;  %v760_v50 = vadd.f32 0.001143296, %v759_v12 }
 0x10e   :  { %v722_v4 = vadd.f32 0.014752088, %v721_v20  ;;  %v1956_v28 = vmul.f32 %v353_v38, %v1847_v1  ;;  %v1958_v53 = vadd.f32 0.0036580483, %v510_v49  ;;  %v439_v46 = vmul.f32 3.8918573e-05, %v1712_v10 }
 0x10f   :  { %v246_v0 = vadd.f32 0.4994258, %v245_v43  ;;  %v1961_v56 = vadd.f32 1.1283791, %v636_v59  ;;  %v564_v26 = vadd.f32 0.112945676, %v563_v60  ;;  %v761_v37 = vmul.f32 %v760_v50, %v1738_v33 }
 0x110   :  { %2588 = vst [vmem:[#allocation21_spill] sm:$0xff] %v1956_v28  ;;  %v1456_v2 = vpop.eup %1455  ;;  %v723_v57 = vmul.f32 %v722_v4, %v1708_v7  ;;  %v674_v42 = vmul.f32 %v673_v63, %v1875_v16  ;;  %v440_v12 = vadd.f32 0.001143296, %v439_v46  ;;  %v1968_v38 = vadd.f32 0.0036580483, %v830_v27 }
 0x111   :  { %v410_v18 = vmul.f32 %v1456_v2, %v1927_v13  ;;  %v247_v31 = vmul.f32 %v246_v0, %v1664_v41  ;;  %v565_v49 = vmul.f32 %v564_v26, %v1697_v61  ;;  %v762_v29 = vadd.f32 0.014752088, %v761_v37 }
 0x112   :  { %v724_v25 = vadd.f32 0.112945676, %v723_v57  ;;  %v441_v43 = vmul.f32 %v440_v12, %v1712_v10  ;;  %v279_v60 = vmul.f32 3.8918573e-05, %v1710_v9  ;;  %v420_v63 = vand.u32 2147483648, %v1927_v13 }
 0x113   :  { %v411_v59 = vsub.f32 1.0, %v410_v18  ;;  %v1971_v20 = vadd.f32 1.0, %v247_v31  ;;  %v566_v4 = vadd.f32 0.4994258, %v565_v49  ;;  %v763_v41 = vmul.f32 %v762_v29, %v1738_v33 }
 0x114   :  { %v725_v50 = vmul.f32 %v724_v25, %v1708_v7  ;;  %vm415_vm0 = vweird.f32 %v1456_v2  ;;  %v418_v0 = vand.u32 2147483647, %v1927_v13  ;;  %v675_v46 = vadd.f32 0.18741608, %v674_v42 }
 0x115   :  { %v412_v27 = vmul.f32 %v1456_v2, %v411_v59  ;;  %1457 = vrcp.f32 %v1971_v20  ;;  %vm414_vm1 = vweird.f32 %v1927_v13  ;;  %v567_v26 = vmul.f32 %v566_v4, %v1697_v61 }
 0x116   :  { %v726_v57 = vadd.f32 0.4994258, %v725_v50  ;;  %v764_v18 = vadd.f32 0.112945676, %v763_v41  ;;  %v442_v31 = vadd.f32 0.014752088, %v441_v43  ;;  %vm416_vm2 = vmor %vm414_vm1, %vm415_vm0  ;;  %v1989_v61 = vmul.f32 %v675_v46, %v1875_v16 }
 0x117   :  { %v413_v37 = vadd.f32 %v1456_v2, %v412_v27  ;;  %v280_v12 = vadd.f32 0.001143296, %v279_v60  ;;  %v421_v49 = vor.u32 1.1754944e-38, %v420_v63  ;;  %v258_v25 = vand.u32 2147483647, %v1971_v20 }
 0x118   :  { %v1983_v29 = vadd.f32 1.0, %v567_v26  ;;  %v727_v59 = vmul.f32 %v726_v57, %v1708_v7  ;;  %vm419_vm3 = vcmp.eq.f32.partialorder %v418_v0, 8.507059e+37  ;;  %v765_v42 = vmul.f32 %v764_v18, %v1738_v33 }
 0x119   :  { %v417_v28 = vsel %vm416_vm2, %v1456_v2, %v413_v37  ;;  %v443_v13 = vmul.f32 %v442_v31, %v1712_v10  ;;  %v260_v43 = vand.u32 2147483648, %v1971_v20  ;;  %v281_v2 = vmul.f32 %v280_v12, %v1710_v9 }
 0x11a   :  { %v422_v4 = vsel %vm419_vm3, %v421_v49, %v417_v28  ;;  %1459 = vrcp.f32 %v1983_v29  ;;  %v1994_v50 = vadd.f32 1.0, %v727_v59  ;;  %v766_v7 = vadd.f32 0.4994258, %v765_v42 }
 0x11b   :  { %v1458_v60 = vpop.eup %1457  ;;  %v423_v63 = vmul.f32 %v422_v4, %v1855_v51  ;;  %vm254_vm4 = vweird.f32 %v1971_v20  ;;  %vm1999_vm5 = vcmp.eq.f32.partialorder %v258_v25, 8.507059e+37  ;;  %v444_v28 = vadd.f32 0.112945676, %v443_v13 }
 0x11c   :  { %v250_v41 = vmul.f32 %v1458_v60, %v1971_v20  ;;  %v578_v46 = vand.u32 2147483647, %v1983_v29  ;;  %v580_v26 = vand.u32 2147483648, %v1983_v29  ;;  %1461 = vrcp.f32 %v1994_v50 }
 0x11d   :  { %v1353_v0 = vclamps-f32 %v423_v63, 1.0  ;;  %v261_v57 = vor.u32 1.1754944e-38, %v260_v43  ;;  %v767_v37 = vmul.f32 %v766_v7, %v1738_v33  ;;  %v319_v18 = vmul.f32 3.8918573e-05, %v1773_v45 }
 0x11e   :  { %v251_v51 = vsub.f32 1.0, %v250_v41  ;;  %vm574_vm6 = vweird.f32 %v1983_v29  ;;  %v445_v12 = vmul.f32 %v444_v28, %v1712_v10  ;;  %v282_v49 = vadd.f32 0.014752088, %v281_v2 }
 0x11f   :  { %v870_v31 = vadd.f32 1.0, %v1353_v0  ;;  %vm255_vm7 = vweird.f32 %v1458_v60  ;;  %v738_v42 = vand.u32 2147483647, %v1994_v50  ;;  %v2011_v13 = vadd.f32 1.0, %v767_v37 }
 0x120   :  { %v1460_v25 = vpop.eup %1459  ;;  %v252_v59 = vmul.f32 %v1458_v60, %v251_v51  ;;  %vm2017_vm8 = vcmp.eq.f32.partialorder %v578_v46, 8.507059e+37  ;;  %v581_v63 = vor.u32 1.1754944e-38, %v580_v26  ;;  %v446_v7 = vadd.f32 0.4994258, %v445_v12  ;;  %vm256_vm10 = vmor %vm254_vm4, %vm255_vm7 }
 0x121   :  { %v2014_v4 = vmul.f32 %v870_v31, %v1746_v48  ;;  %v570_v33 = vmul.f32 %v1460_v25, %v1983_v29  ;;  %vm734_vm9 = vweird.f32 %v1994_v50  ;;  %v740_v2 = vand.u32 2147483648, %v1994_v50 }
 0x122   :  { %v253_v41 = vadd.f32 %v1458_v60, %v252_v59  ;;  %1463 = vrcp.f32 %v2011_v13  ;;  %v1462_v28 = vpop.eup %1461  ;;  %v447_v0 = vmul.f32 %v446_v7, %v1712_v10  ;;  %v283_v46 = vmul.f32 %v282_v49, %v1710_v9 }
 0x123   :  { %2591 = vst [vmem:[#allocation22_spill] sm:$0xff] %v2014_v4  ;;  %906 = vadd.xlane.f32.xlu2 %v2014_v4  ;;  %v571_v48 = vsub.f32 1.0, %v570_v33  ;;  %v320_v26 = vadd.f32 0.001143296, %v319_v18  ;;  %vm575_vm11 = vweird.f32 %v1460_v25  ;;  %v730_v37 = vmul.f32 %v1462_v28, %v1994_v50 }
 0x124   :  { %v257_v51 = vsel %vm256_vm10, %v1458_v60, %v253_v41  ;;  %vm2030_vm12 = vcmp.eq.f32.partialorder %v738_v42, 8.507059e+37  ;;  %v778_v12 = vand.u32 2147483647, %v2011_v13  ;;  %v780_v33 = vand.u32 2147483648, %v2011_v13  ;;  %vm576_vm14 = vmor %vm574_vm6, %vm575_vm11 }
 0x125   :  { %v262_v20 = vsel %vm1999_vm5, %v261_v57, %v257_v51  ;;  %v572_v59 = vmul.f32 %v1460_v25, %v571_v48  ;;  %v2038_v10 = vadd.f32 1.0, %v447_v0  ;;  %v731_v60 = vsub.f32 1.0, %v730_v37 }
 0x126   :  { %v263_v18 = vmul.f32 %v262_v20, %v1844_v34  ;;  %v741_v49 = vor.u32 1.1754944e-38, %v740_v2  ;;  %v284_v7 = vadd.f32 0.112945676, %v283_v46  ;;  %vm774_vm13 = vweird.f32 %v2011_v13 }
 0x127   :  { %v573_v41 = vadd.f32 %v1460_v25, %v572_v59  ;;  %1465 = vrcp.f32 %v2038_v10  ;;  %v321_v42 = vmul.f32 %v320_v26, %v1773_v45  ;;  %v732_v57 = vmul.f32 %v1462_v28, %v731_v60 }
 0x128   :  { %v1464_v4 = vpop.eup %1463  ;;  %v1349_v27 = vclamps-f32 %v263_v18, 1.0  ;;  %vm735_vm15 = vweird.f32 %v1462_v28  ;;  %v285_v34 = vmul.f32 %v284_v7, %v1710_v9  ;;  %vm2049_vm0 = vcmp.eq.f32.partialorder %v778_v12, 8.507059e+37 }
 0x129   :  { %v577_v48 = vsel %vm576_vm14, %v1460_v25, %v573_v41  ;;  %v770_v2 = vmul.f32 %v1464_v4, %v2011_v13  ;;  %v781_v46 = vor.u32 1.1754944e-38, %v780_v33  ;;  %v733_v37 = vadd.f32 %v1462_v28, %v732_v57  ;;  %vm736_vm2 = vmor %vm734_vm9, %vm735_vm15 }
 0x12a   :  { %v866_v51 = vadd.f32 1.0, %v1349_v27  ;;  %v582_v26 = vsel %vm2017_vm8, %v581_v63, %v577_v48  ;;  %vm775_vm1 = vweird.f32 %v1464_v4  ;;  %v286_v25 = vadd.f32 0.4994258, %v285_v34 }
 0x12b   :  { %v583_v29 = vmul.f32 %v582_v26, %v1889_v3  ;;  %v771_v20 = vsub.f32 1.0, %v770_v2  ;;  %v322_v59 = vadd.f32 0.014752088, %v321_v42  ;;  %v737_v18 = vsel %vm736_vm2, %v1462_v28, %v733_v37  ;;  %vm776_vm3 = vmor %vm774_vm13, %vm775_vm1 }
 0x12c   :  { %v2059_v12 = vmul.f32 %v866_v51, %v1740_v39  ;;  %v599_v33 = vmul.f32 3.8918573e-05, %v1729_v22  ;;  %v679_v60 = vmul.f32 3.8918573e-05, %v1875_v16  ;;  %v742_v7 = vsel %vm2030_vm12, %v741_v49, %v737_v18 }
 0x12d   :  { %v1466_v43 = vpop.eup %1465  ;;  %v1357_v63 = vclamps-f32 %v583_v29, 1.0  ;;  %v772_v3 = vmul.f32 %v1464_v4, %v771_v20  ;;  %v287_v50 = vmul.f32 %v286_v25, %v1710_v9  ;;  %v743_v41 = vmul.f32 %v742_v7, %v1902_v6 }
 0x12e   :  { %898 = vadd.xlane.f32.xlu0 %v2059_v12  ;;  %v450_v39 = vmul.f32 %v1466_v43, %v2038_v10  ;;  %v458_v28 = vand.u32 2147483647, %v2038_v10  ;;  %v323_v42 = vmul.f32 %v322_v59, %v1773_v45  ;;  %v600_v48 = vadd.f32 0.001143296, %v599_v33 }
 0x12f   :  { %v874_v27 = vadd.f32 1.0, %v1357_v63  ;;  %v773_v57 = vadd.f32 %v1464_v4, %v772_v3  ;;  %v2071_v34 = vadd.f32 1.0, %v287_v50  ;;  %v1361_v31 = vclamps-f32 %v743_v41, 1.0 }
 0x130   :  { %v451_v9 = vsub.f32 1.0, %v450_v39  ;;  %v324_v49 = vadd.f32 0.112945676, %v323_v42  ;;  %v680_v2 = vadd.f32 0.001143296, %v679_v60  ;;  %v460_v26 = vand.u32 2147483648, %v2038_v10 }
 0x131   :  { %v2077_v6 = vmul.f32 %v874_v27, %v1759_v62  ;;  %v777_v51 = vsel %vm776_vm3, %v1464_v4, %v773_v57  ;;  %1467 = vrcp.f32 %v2071_v34  ;;  %v878_v37 = vadd.f32 1.0, %v1361_v31 }
 0x132   :  { %v782_v29 = vsel %vm2049_vm0, %v781_v46, %v777_v51  ;;  %v452_v20 = vmul.f32 %v1466_v43, %v451_v9  ;;  %vm455_vm4 = vweird.f32 %v1466_v43  ;;  %vm454_vm5 = vweird.f32 %v2038_v10 }
 0x133   :  { %914 = vadd.xlane.f32.xlu2 %v2077_v6  ;;  %v783_v13 = vmul.f32 %v782_v29, %v1934_v54  ;;  %v325_v62 = vmul.f32 %v324_v49, %v1773_v45  ;;  %v601_v4 = vmul.f32 %v600_v48, %v1729_v22  ;;  %v2089_v25 = vmul.f32 %v878_v37, %v1762_v36  ;;  %vm456_vm7 = vmor %vm454_vm5, %vm455_vm4 }
 0x134   :  { %v453_v59 = vadd.f32 %v1466_v43, %v452_v20  ;;  %vm459_vm6 = vcmp.eq.f32.partialorder %v458_v28, 8.507059e+37  ;;  %v681_v0 = vmul.f32 %v680_v2, %v1875_v16  ;;  %v461_v18 = vor.u32 1.1754944e-38, %v460_v26 }
 0x135   :  { %v1362_v46 = vclamps-f32 %v783_v13, 1.0  ;;  %v326_v33 = vadd.f32 0.4994258, %v325_v62  ;;  %v602_v60 = vadd.f32 0.014752088, %v601_v4  ;;  %v300_v27 = vand.u32 2147483648, %v2071_v34 }
 0x136   :  { %922 = vadd.xlane.f32.xlu0 %v2089_v25  ;;  %v457_v54 = vsel %vm456_vm7, %v1466_v43, %v453_v59  ;;  %v682_v10 = vadd.f32 0.014752088, %v681_v0  ;;  %v639_v63 = vmul.f32 3.8918573e-05, %v1819_v15  ;;  %v479_v7 = vmul.f32 3.8918573e-05, %v1796_v30 }
 0x137   :  { %v1468_v3 = vpop.eup %1467  ;;  %v879_v36 = vadd.f32 1.0, %v1362_v46  ;;  %v462_v50 = vsel %vm459_vm6, %v461_v18, %v457_v54  ;;  %v327_v41 = vmul.f32 %v326_v33, %v1773_v45  ;;  %v603_v39 = vmul.f32 %v602_v60, %v1729_v22 }
 0x138   :  { %v463_v28 = vmul.f32 %v462_v50, %v1910_v32  ;;  %v290_v42 = vmul.f32 %v1468_v3, %v2071_v34  ;;  %v683_v43 = vmul.f32 %v682_v10, %v1875_v16  ;;  %v640_v9 = vadd.f32 0.001143296, %v639_v63 }
 0x139   :  { %v2102_v57 = vmul.f32 %v879_v36, %v1817_v14  ;;  %v2104_v48 = vadd.f32 1.0, %v327_v41  ;;  %v604_v31 = vadd.f32 0.112945676, %v603_v39  ;;  %v480_v51 = vadd.f32 0.001143296, %v479_v7 }
 0x13a   :  { %v1354_v49 = vclamps-f32 %v463_v28, 1.0  ;;  %v291_v2 = vsub.f32 1.0, %v290_v42  ;;  %v684_v45 = vadd.f32 0.112945676, %v683_v43  ;;  %v677_v26 = vadd.f32 1.1283791, %v1989_v61 }
 0x13b   :  { %924 = vadd.xlane.f32.xlu1 %v2102_v57  ;;  %vm295_vm8 = vweird.f32 %v1468_v3  ;;  %v298_v32 = vand.u32 2147483647, %v2071_v34  ;;  %1469 = vrcp.f32 %v2104_v48  ;;  %v605_v29 = vmul.f32 %v604_v31, %v1729_v22 }
 0x13c   :  { %v871_v37 = vadd.f32 1.0, %v1354_v49  ;;  %v292_v14 = vmul.f32 %v1468_v3, %v291_v2  ;;  %v685_v20 = vmul.f32 %v684_v45, %v1875_v16  ;;  %vm294_vm9 = vweird.f32 %v2071_v34 }
 0x13d   :  { %v301_v13 = vor.u32 1.1754944e-38, %v300_v27  ;;  %v641_v62 = vmul.f32 %v640_v9, %v1819_v15  ;;  %v481_v61 = vmul.f32 %v480_v51, %v1796_v30  ;;  %v606_v0 = vadd.f32 0.4994258, %v605_v29  ;;  %vm296_vm10 = vmor %vm294_vm9, %vm295_vm8 }
 0x13e   :  { %v2116_v4 = vmul.f32 %v871_v37, %v1771_v8  ;;  %v293_v59 = vadd.f32 %v1468_v3, %v292_v14  ;;  %v686_v46 = vadd.f32 0.4994258, %v685_v20  ;;  %v832_v18 = vmul.f32 %v1968_v38, %v1913_v11 }
 0x13f   :  { %v642_v33 = vadd.f32 0.014752088, %v641_v62  ;;  %v482_v60 = vadd.f32 0.014752088, %v481_v61  ;;  %v799_v34 = vmul.f32 3.8918573e-05, %v1827_v21  ;;  %v607_v10 = vmul.f32 %v606_v0, %v1729_v22 }
 0x140   :  { %908 = vadd.xlane.f32.xlu2 %v2116_v4  ;;  %v297_v54 = vsel %vm296_vm10, %v1468_v3, %v293_v59  ;;  %vm299_vm11 = vcmp.eq.f32.partialorder %v298_v32, 8.507059e+37  ;;  %v687_v8 = vmul.f32 %v686_v46, %v1875_v16  ;;  %v338_v36 = vand.u32 2147483647, %v2104_v48 }
 0x141   :  { %v1470_v63 = vpop.eup %1469  ;;  %v302_v7 = vsel %vm299_vm11, %v301_v13, %v297_v54  ;;  %v643_v38 = vmul.f32 %v642_v33, %v1819_v15  ;;  %v483_v50 = vmul.f32 %v482_v60, %v1796_v30  ;;  %v2130_v28 = vadd.f32 1.0, %v607_v10 }
 0x142   :  { %v303_v41 = vmul.f32 %v302_v7, %v1905_v52  ;;  %v330_v39 = vmul.f32 %v1470_v63, %v2104_v48  ;;  %v800_v3 = vadd.f32 0.001143296, %v799_v34  ;;  %v2134_v22 = vmul.f32 %v1961_v56, %v1801_v44 }
 0x143   :  { %v2136_v16 = vadd.f32 1.0, %v687_v8  ;;  %v644_v42 = vadd.f32 0.112945676, %v643_v38  ;;  %v484_v27 = vadd.f32 0.112945676, %v483_v50  ;;  %v340_v9 = vand.u32 2147483648, %v2104_v48 }
 0x144   :  { %v1350_v43 = vclamps-f32 %v303_v41, 1.0  ;;  %v331_v31 = vsub.f32 1.0, %v330_v39  ;;  %1471 = vrcp.f32 %v2130_v28  ;;  %v2141_v52 = vmul.f32 %v677_v26, %v1858_v24 }
 0x145   :  { %v2143_v49 = vadd.f32 0.05243302, %v832_v18  ;;  %vm334_vm12 = vweird.f32 %v2104_v48  ;;  %1473 = vrcp.f32 %v2136_v16  ;;  %vm335_vm13 = vweird.f32 %v1470_v63 }
 0x146   :  { %v867_v44 = vadd.f32 1.0, %v1350_v43  ;;  %v332_v56 = vmul.f32 %v1470_v63, %v331_v31  ;;  %v801_v2 = vmul.f32 %v800_v3, %v1827_v21  ;;  %v618_v45 = vand.u32 2147483647, %v2130_v28  ;;  %vm336_vm15 = vmor %vm334_vm12, %vm335_vm13 }
 0x147   :  { %v645_v51 = vmul.f32 %v644_v42, %v1819_v15  ;;  %v485_v32 = vmul.f32 %v484_v27, %v1796_v30  ;;  %v359_v24 = vmul.f32 3.8918573e-05, %v1847_v1  ;;  %vm339_vm14 = vcmp.eq.f32.partialorder %v338_v36, 8.507059e+37 }
 0x148   :  { %v2153_v26 = vmul.f32 %v867_v44, %v1768_v5  ;;  %v333_v37 = vadd.f32 %v1470_v63, %v332_v56  ;;  %v341_v48 = vor.u32 1.1754944e-38, %v340_v9  ;;  %vm614_vm0 = vweird.f32 %v2130_v28 }
 0x149   :  { %v620_v14 = vand.u32 2147483648, %v2130_v28  ;;  %v646_v29 = vadd.f32 0.4994258, %v645_v51  ;;  %v486_v20 = vadd.f32 0.4994258, %v485_v32  ;;  %vm694_vm1 = vweird.f32 %v2136_v16 }
 0x14a   :  { %v1472_v13 = vpop.eup %1471  ;;  %900 = vadd.xlane.f32.xlu0 %v2153_v26  ;;  %v337_v62 = vsel %vm336_vm15, %v1470_v63, %v333_v37  ;;  %v698_v61 = vand.u32 2147483647, %v2136_v16  ;;  %v700_v5 = vand.u32 2147483648, %v2136_v16  ;;  %v802_v59 = vadd.f32 0.014752088, %v801_v2 }
 0x14b   :  { %v1474_v0 = vpop.eup %1473  ;;  %v342_v46 = vsel %vm339_vm14, %v341_v48, %v337_v62  ;;  %v610_v18 = vmul.f32 %v1472_v13, %v2130_v28  ;;  %vm2162_vm2 = vcmp.eq.f32.partialorder %v618_v45, 8.507059e+37  ;;  %v647_v60 = vmul.f32 %v646_v29, %v1819_v15 }
 0x14c   :  { %v360_v34 = vadd.f32 0.001143296, %v359_v24  ;;  %v343_v54 = vmul.f32 %v342_v46, %v1943_v40  ;;  %v690_v10 = vmul.f32 %v1474_v0, %v2136_v16  ;;  %v487_v8 = vmul.f32 %v486_v20, %v1796_v30 }
 0x14d   :  { %v839_v63 = vmul.f32 3.8918573e-05, %v1913_v11  ;;  %v611_v7 = vsub.f32 1.0, %v610_v18  ;;  %vm615_vm3 = vweird.f32 %v1472_v13  ;;  %v621_v36 = vor.u32 1.1754944e-38, %v620_v14 }
 0x14e   :  { %v2171_v38 = vadd.f32 1.0, %v647_v60  ;;  %v1351_v50 = vclamps-f32 %v343_v54, 1.0  ;;  %v691_v41 = vsub.f32 1.0, %v690_v10  ;;  %vm695_vm4 = vweird.f32 %v1474_v0  ;;  %vm616_vm6 = vmor %vm614_vm0, %vm615_vm3 }
 0x14f   :  { %v2173_v39 = vadd.f32 1.0, %v487_v8  ;;  %v612_v15 = vmul.f32 %v1472_v13, %v611_v7  ;;  %v803_v40 = vmul.f32 %v802_v59, %v1827_v21  ;;  %v361_v3 = vmul.f32 %v360_v34, %v1847_v1  ;;  %vm696_vm7 = vmor %vm694_vm1, %vm695_vm4 }
 0x150   :  { %1475 = vrcp.f32 %v2171_v38  ;;  %v868_v30 = vadd.f32 1.0, %v1351_v50  ;;  %v692_v42 = vmul.f32 %v1474_v0, %v691_v41  ;;  %v840_v27 = vadd.f32 0.001143296, %v839_v63 }
 0x151   :  { %1477 = vrcp.f32 %v2173_v39  ;;  %v613_v43 = vadd.f32 %v1472_v13, %v612_v15  ;;  %vm2179_vm5 = vcmp.eq.f32.partialorder %v698_v61, 8.507059e+37  ;;  %v701_v9 = vor.u32 1.1754944e-38, %v700_v5 }
 0x152   :  { %v519_v44 = vmul.f32 3.8918573e-05, %v1891_v55  ;;  %v2185_v56 = vmul.f32 %v868_v30, %v1851_v23  ;;  %v693_v2 = vadd.f32 %v1474_v0, %v692_v42  ;;  %v658_v45 = vand.u32 2147483647, %v2171_v38 }
 0x153   :  { %v660_v51 = vand.u32 2147483648, %v2171_v38  ;;  %v617_v32 = vsel %vm616_vm6, %v1472_v13, %v613_v43  ;;  %vm494_vm8 = vweird.f32 %v2173_v39  ;;  %v498_v24 = vand.u32 2147483647, %v2173_v39 }
 0x154   :  { %v804_v23 = vadd.f32 0.112945676, %v803_v40  ;;  %v362_v37 = vadd.f32 0.014752088, %v361_v3  ;;  %902 = vadd.xlane.f32.xlu1 %v2185_v56  ;;  %v622_v28 = vsel %vm2162_vm2, %v621_v36, %v617_v32  ;;  %v697_v48 = vsel %vm696_vm7, %v1474_v0, %v693_v2 }
 0x155   :  { %vm654_vm9 = vweird.f32 %v2171_v38  ;;  %v500_v14 = vand.u32 2147483648, %v2173_v39  ;;  %v841_v29 = vmul.f32 %v840_v27, %v1913_v11  ;;  %v623_v20 = vmul.f32 %v622_v28, %v1925_v47 }
 0x156   :  { %v1476_v16 = vpop.eup %1475  ;;  %v702_v13 = vsel %vm2179_vm5, %v701_v9, %v697_v48  ;;  %v805_v62 = vmul.f32 %v804_v23, %v1827_v21  ;;  %v363_v61 = vmul.f32 %v362_v37, %v1847_v1  ;;  %v520_v36 = vadd.f32 0.001143296, %v519_v44 }
 0x157   :  { %v1478_v5 = vpop.eup %1477  ;;  %v703_v59 = vmul.f32 %v702_v13, %v2141_v52  ;;  %v650_v0 = vmul.f32 %v1476_v16, %v2171_v38  ;;  %vm655_vm10 = vweird.f32 %v1476_v16  ;;  %v842_v46 = vadd.f32 0.014752088, %v841_v29  ;;  %v2602_v13 = vld [vmem:[#allocation21_spill] sm:$0xff] }
 0x158   :  { %v1358_v18 = vclamps-f32 %v623_v20, 1.0  ;;  %v490_v33 = vmul.f32 %v1478_v5, %v2173_v39  ;;  %vm495_vm11 = vweird.f32 %v1478_v5  ;;  %v806_v60 = vadd.f32 0.4994258, %v805_v62  ;;  %vm656_vm12 = vmor %vm654_vm9, %vm655_vm10 }
 0x159   :  { %v1360_v47 = vclamps-f32 %v703_v59, 1.0  ;;  %v651_v34 = vsub.f32 1.0, %v650_v0  ;;  %v364_v54 = vadd.f32 0.112945676, %v363_v61  ;;  %v843_v10 = vmul.f32 %v842_v46, %v1913_v11  ;;  %vm496_vm14 = vmor %vm494_vm8, %vm495_vm11 }
 0x15a   :  { %v875_v8 = vadd.f32 1.0, %v1358_v18  ;;  %v491_v63 = vsub.f32 1.0, %v490_v33  ;;  %v807_v7 = vmul.f32 %v806_v60, %v1827_v21  ;;  %v521_v42 = vmul.f32 %v520_v36, %v1891_v55 }
 0x15b   :  { %v877_v52 = vadd.f32 1.0, %v1360_v47  ;;  %v652_v50 = vmul.f32 %v1476_v16, %v651_v34  ;;  %v365_v41 = vmul.f32 %v364_v54, %v1847_v1  ;;  %v844_v15 = vadd.f32 0.112945676, %v843_v10 }
 0x15c   :  { %v2215_v40 = vmul.f32 %v875_v8, %v1781_v19  ;;  %v492_v3 = vmul.f32 %v1478_v5, %v491_v63  ;;  %v2217_v30 = vadd.f32 1.0, %v807_v7  ;;  %vm659_vm13 = vcmp.eq.f32.partialorder %v658_v45, 8.507059e+37 }
 0x15d   :  { %v2221_v27 = vmul.f32 %v877_v52, %v1940_v35  ;;  %v653_v43 = vadd.f32 %v1476_v16, %v652_v50  ;;  %v366_v31 = vadd.f32 0.4994258, %v365_v41  ;;  %v845_v9 = vmul.f32 %v844_v15, %v1913_v11  ;;  %v2606_v15 = vld [vmem:[#allocation14_spill] sm:$0xff] }
 0x15e   :  { %916 = vadd.xlane.f32.xlu0 %v2215_v40  ;;  %v661_v19 = vor.u32 1.1754944e-38, %v660_v51  ;;  %v493_v44 = vadd.f32 %v1478_v5, %v492_v3  ;;  %1479 = vrcp.f32 %v2217_v30  ;;  %v501_v35 = vor.u32 1.1754944e-38, %v500_v14 }
 0x15f   :  { %920 = vadd.xlane.f32.xlu2 %v2221_v27  ;;  %v657_v2 = vsel %vm656_vm12, %v1476_v16, %v653_v43  ;;  %v367_v32 = vmul.f32 %v366_v31, %v1847_v1  ;;  %v846_v23 = vadd.f32 0.4994258, %v845_v9  ;;  %vm499_vm15 = vcmp.eq.f32.partialorder %v498_v24, 8.507059e+37 }
 0x160   :  { %v662_v37 = vsel %vm659_vm13, %v661_v19, %v657_v2  ;;  %v497_v28 = vsel %vm496_vm14, %v1478_v5, %v493_v44  ;;  %v522_v38 = vadd.f32 0.014752088, %v521_v42  ;;  %v796_v45 = vmul.f32 %v1950_v58, %v1827_v21 }
 0x161   :  { %v663_v51 = vmul.f32 %v662_v37, %v2134_v22  ;;  %v502_v48 = vsel %vm499_vm15, %v501_v35, %v497_v28  ;;  %v2237_v29 = vadd.f32 1.0, %v367_v32  ;;  %v512_v39 = vmul.f32 %v1958_v53, %v1891_v55  ;;  %v2603_v53 = vld [vmem:[#allocation11_spill] sm:$0xff] }
 0x162   :  { %v503_v14 = vmul.f32 %v502_v48, %v1948_v17  ;;  %v847_v16 = vmul.f32 %v846_v23, %v1913_v11  ;;  %v523_v20 = vmul.f32 %v522_v38, %v1891_v55  ;;  %v355_v24 = vadd.f32 0.18741608, %v2602_v13  ;;  %v2604_v17 = vld [vmem:[#allocation12_spill] sm:$0xff] }
 0x163   :  { %v834_v62 = vmul.f32 %v2143_v49, %v1913_v11  ;;  %v1359_v21 = vclamps-f32 %v663_v51, 1.0  ;;  %1481 = vrcp.f32 %v2237_v29  ;;  %v200_v59 = vmul.f32 0.5, %v2603_v53 }
 0x164   :  { %v1480_v58 = vpop.eup %1479  ;;  %v1355_v22 = vclamps-f32 %v503_v14, 1.0  ;;  %v2248_v61 = vadd.f32 1.0, %v847_v16  ;;  %v524_v5 = vadd.f32 0.112945676, %v523_v20  ;;  %v204_v0 = vmul.f32 0.5, %v2604_v17 }
 0x165   :  { %v876_v46 = vadd.f32 1.0, %v1359_v21  ;;  %v810_v18 = vmul.f32 %v1480_v58, %v2217_v30  ;;  %v797_v33 = vadd.f32 1.1283791, %v796_v45  ;;  %v513_v60 = vadd.f32 0.05243302, %v512_v39 }
 0x166   :  { %v872_v47 = vadd.f32 1.0, %v1355_v22  ;;  %1483 = vrcp.f32 %v2248_v61  ;;  %v356_v49 = vmul.f32 %v355_v24, %v1847_v1  ;;  %v835_v34 = vadd.f32 0.18741608, %v834_v62  ;;  %v2605_v1 = vld [vmem:[#allocation13_spill] sm:$0xff] }
 0x167   :  { %v2255_v54 = vmul.f32 %v876_v46, %v204_v0  ;;  %v811_v10 = vsub.f32 1.0, %v810_v18  ;;  %v820_v63 = vand.u32 2147483648, %v2217_v30  ;;  %v525_v7 = vmul.f32 %v524_v5, %v1891_v55  ;;  %v2608_v18 = vld [vmem:[#allocation20_spill] sm:$0xff] }
 0x168   :  { %v2257_v8 = vmul.f32 %v872_v47, %v200_v59  ;;  %vm814_vm0 = vweird.f32 %v2217_v30  ;;  %vm815_vm1 = vweird.f32 %v1480_v58  ;;  %v818_v50 = vand.u32 2147483647, %v2217_v30 }
 0x169   :  { %v1482_v36 = vpop.eup %1481  ;;  %918 = vadd.xlane.f32.xlu1 %v2255_v54  ;;  %v812_v52 = vmul.f32 %v1480_v58, %v811_v10  ;;  %v208_v41 = vmul.f32 0.5, %v2605_v1  ;;  %v798_v3 = vmul.f32 %v797_v33, %v2606_v15  ;;  %v526_v43 = vadd.f32 0.4994258, %v525_v7  ;;  %vm816_vm2 = vmor %vm814_vm0, %vm815_vm1 }
 0x16a   :  { %910 = vadd.xlane.f32.xlu0 %v2257_v8  ;;  %v370_v42 = vmul.f32 %v1482_v36, %v2237_v29  ;;  %v357_v31 = vadd.f32 1.1283791, %v356_v49  ;;  %v514_v9 = vmul.f32 %v513_v60, %v1891_v55  ;;  %v836_v19 = vmul.f32 %v835_v34, %v1913_v11 }
 0x16b   :  { %v813_v44 = vadd.f32 %v1480_v58, %v812_v52  ;;  %v821_v35 = vor.u32 1.1754944e-38, %v820_v63  ;;  %v380_v30 = vand.u32 2147483648, %v2237_v29  ;;  %v527_v23 = vmul.f32 %v526_v43, %v1891_v55  ;;  %v2609_v52 = vld [vmem:[#allocation15_spill] sm:$0xff] }
 0x16c   :  { %v1484_v2 = vpop.eup %1483  ;;  %v371_v32 = vsub.f32 1.0, %v370_v42  ;;  %vm819_vm3 = vcmp.eq.f32.partialorder %v818_v50, 8.507059e+37  ;;  %v378_v28 = vand.u32 2147483647, %v2237_v29  ;;  %vm375_vm4 = vweird.f32 %v1482_v36  ;;  %v2610_v42 = vld [vmem:[#allocation19_spill] sm:$0xff] }
 0x16d   :  { %v817_v37 = vsel %vm816_vm2, %v1480_v58, %v813_v44  ;;  %v850_v38 = vmul.f32 %v1484_v2, %v2248_v61  ;;  %v528_v48 = vadd.f32 1.0, %v527_v23  ;;  %v837_v11 = vadd.f32 1.1283791, %v836_v19  ;;  %v2607_v58 = vld [vmem:[#allocation16_spill] sm:$0xff] }
 0x16e   :  { %v822_v45 = vsel %vm819_vm3, %v821_v35, %v817_v37  ;;  %v372_v51 = vmul.f32 %v1482_v36, %v371_v32  ;;  %vm374_vm5 = vweird.f32 %v2237_v29  ;;  %v381_v20 = vor.u32 1.1754944e-38, %v380_v30  ;;  %v2611_v30 = vld [vmem:[#allocation18_spill] sm:$0xff] }
 0x16f   :  { %v823_v39 = vmul.f32 %v822_v45, %v798_v3  ;;  %v851_v14 = vsub.f32 1.0, %v850_v38  ;;  %v860_v13 = vand.u32 2147483648, %v2248_v61  ;;  %1485 = vrcp.f32 %v528_v48  ;;  %vm376_vm6 = vmor %vm374_vm5, %vm375_vm4 }
 0x170   :  { %v373_v16 = vadd.f32 %v1482_v36, %v372_v51  ;;  %vm855_vm7 = vweird.f32 %v1484_v2  ;;  %v858_v21 = vand.u32 2147483647, %v2248_v61  ;;  %v358_v22 = vmul.f32 %v357_v31, %v2607_v58 }
 0x171   :  { %v1363_v24 = vclamps-f32 %v823_v39, 1.0  ;;  %v852_v62 = vmul.f32 %v1484_v2, %v851_v14  ;;  %v515_v5 = vadd.f32 0.18741608, %v514_v9  ;;  %vm379_vm8 = vcmp.eq.f32.partialorder %v378_v28, 8.507059e+37 }
 0x172   :  { %v377_v53 = vsel %vm376_vm6, %v1482_v36, %v373_v16  ;;  %vm854_vm9 = vweird.f32 %v2248_v61  ;;  %v861_v46 = vor.u32 1.1754944e-38, %v860_v13  ;;  %v838_v33 = vmul.f32 %v837_v11, %v2608_v18  ;;  %v2612_v11 = vld [vmem:[#allocation17_spill] sm:$0xff] }
 0x173   :  { %v880_v59 = vadd.f32 1.0, %v1363_v24  ;;  %v382_v17 = vsel %vm379_vm8, %v381_v20, %v377_v53  ;;  %v853_v29 = vadd.f32 %v1484_v2, %v852_v62  ;;  %vm856_vm10 = vmor %vm854_vm9, %vm855_vm7  ;;  %vm859_vm11 = vcmp.eq.f32.partialorder %v858_v21, 8.507059e+37 }
 0x174   :  { %v383_v0 = vmul.f32 %v382_v17, %v358_v22  ;;  %v516_v34 = vmul.f32 %v515_v5, %v1891_v55  ;;  %v197_v61 = vmul.f32 0.5, %v2609_v52  ;;  %v540_v31 = vand.u32 2147483648, %v528_v48  ;;  %v2613_v22 = vld [vmem:[#allocation22_spill] sm:$0xff] }
 0x175   :  { %v2280_v60 = vmul.f32 %v880_v59, %v208_v41  ;;  %v857_v47 = vsel %vm856_vm10, %v1484_v2, %v853_v29  ;;  %v1486_v49 = vpop.eup %1485  ;;  %v209_v41 = vmul.f32 0.5, %v2610_v42  ;;  %v538_v55 = vand.u32 2147483647, %v528_v48 }
 0x176   :  { %v1352_v10 = vclamps-f32 %v383_v0, 1.0  ;;  %v862_v63 = vsel %vm859_vm11, %v861_v46, %v857_v47  ;;  %v530_v36 = vmul.f32 %v1486_v49, %v528_v48  ;;  %v517_v3 = vadd.f32 1.1283791, %v516_v34 }
 0x177   :  { %926 = vadd.xlane.f32.xlu2 %v2280_v60  ;;  %v863_v7 = vmul.f32 %v862_v63, %v838_v33  ;;  %vm535_vm12 = vweird.f32 %v1486_v49  ;;  %v1605_v44 = vmov 128.0   ;;  %vm534_vm13 = vweird.f32 %v528_v48 }
 0x178   :  { %v869_v50 = vadd.f32 1.0, %v1352_v10  ;;  %v531_v15 = vsub.f32 1.0, %v530_v36  ;;  %1487 = vrcp.f32 %v1605_v44  ;;  %vm536_vm14 = vmor %vm534_vm13, %vm535_vm12  ;;  %v541_v32 = vor.u32 1.1754944e-38, %v540_v31 }
 0x179   :  { %v1364_v1 = vclamps-f32 %v863_v7, 1.0  ;;  %v518_v23 = vmul.f32 %v517_v3, %v2611_v30  ;;  %vm539_vm15 = vcmp.eq.f32.partialorder %v538_v55, 8.507059e+37  ;;  %v201_v39 = vmul.f32 0.5, %v2612_v11 }
 0x17a   :  { %v2286_v43 = vmul.f32 %v869_v50, %v197_v61  ;;  %v532_v19 = vmul.f32 %v1486_v49, %v531_v15 }
 0x17b   :  { %v881_v9 = vadd.f32 1.0, %v1364_v1 }
 0x17c   :  { %904 = vadd.xlane.f32.xlu1 %v2286_v43  ;;  %v533_v35 = vadd.f32 %v1486_v49, %v532_v19 }
 0x17d   :  { %v2289_v2 = vmul.f32 %v881_v9, %v209_v41 }
 0x17e   :  { %v537_v37 = vsel %vm536_vm14, %v1486_v49, %v533_v35  ;;  %v1488_v45 = vpop.eup %1487 }
 0x17f   :  { %928 = vadd.xlane.f32.xlu0 %v2289_v2  ;;  %v542_v28 = vsel %vm539_vm15, %v541_v32, %v537_v37  ;;  %v931_v16 = vmul.f32 128.0, %v1488_v45  ;;  %vm935_vm0 = vweird.f32 %v1488_v45 }
 0x180   :  { %v543_v38 = vmul.f32 %v542_v28, %v518_v23 }
 0x181   :  { %v932_v48 = vsub.f32 1.0, %v931_v16 }
 0x182   :  { %v1356_v51 = vclamps-f32 %v543_v38, 1.0 }
 0x183   :  { %v933_v13 = vmul.f32 %v1488_v45, %v932_v48 }
 0x184   :  { %v873_v14 = vadd.f32 1.0, %v1356_v51 }
 0x185   :  { %v934_v24 = vadd.f32 %v1488_v45, %v933_v13 }
 0x186   :  { %v2294_v20 = vmul.f32 %v873_v14, %v201_v39 }
 0x187   :  { %v2297_v62 = vsel %vm935_vm0, %v1488_v45, %v934_v24 }
 0x188   :  { %912 = vadd.xlane.f32.xlu1 %v2294_v20 }
 0x196   :  { %v907_v21 = vpop.xlane.xlu2 %906 }
 0x197   :  { %v941_v58 = vmul.f32 %v2297_v62, %v907_v21 }
 0x199   :  { %v2301_v5 = vsub.f32 %v2613_v22, %v941_v58 }
 0x19b   :  { %v973_v53 = vmul.f32 %v2301_v5, %v2301_v5 }
 0x19d   :  { %993 = vadd.xlane.f32.xlu2 %v973_v53 }
 0x1a1   :  { %v899_v59 = vpop.xlane.xlu0 %898 }
 0x1a2   :  { %v937_v17 = vmul.f32 %v2297_v62, %v899_v59 }
 0x1a4   :  { %v2307_v29 = vsub.f32 %v2059_v12, %v937_v17 }
 0x1a6   :  { %v969_v0 = vmul.f32 %v2307_v29, %v2307_v29  ;;  %v915_v46 = vpop.xlane.xlu2 %914 }
 0x1a7   :  { %v945_v18 = vmul.f32 %v2297_v62, %v915_v46 }
 0x1a8   :  { %985 = vadd.xlane.f32.xlu1 %v969_v0 }
 0x1a9   :  { %v2313_v33 = vsub.f32 %v2077_v6, %v945_v18  ;;  %v923_v47 = vpop.xlane.xlu0 %922 }
 0x1aa   :  { %v949_v49 = vmul.f32 %v2297_v62, %v923_v47 }
 0x1ab   :  { %v977_v34 = vmul.f32 %v2313_v33, %v2313_v33 }
 0x1ac   :  { %v2319_v10 = vsub.f32 %v2089_v25, %v949_v49 }
 0x1ad   :  { %1001 = vadd.xlane.f32.xlu0 %v977_v34 }
 0x1ae   :  { %v981_v12 = vmul.f32 %v2319_v10, %v2319_v10  ;;  %v925_v52 = vpop.xlane.xlu1 %924 }
 0x1af   :  { %v950_v58 = vmul.f32 %v2297_v62, %v925_v52 }
 0x1b0   :  { %1009 = vadd.xlane.f32.xlu1 %v981_v12 }
 0x1b1   :  { %v2391_v53 = vsub.f32 %v2102_v57, %v950_v58 }
 0x1b3   :  { %v909_v63 = vpop.xlane.xlu2 %908 }
 0x1b4   :  { %v942_v7 = vmul.f32 %v2297_v62, %v909_v63 }
 0x1b6   :  { %v2325_v6 = vsub.f32 %v2116_v4, %v942_v7 }
 0x1b8   :  { %v974_v36 = vmul.f32 %v2325_v6, %v2325_v6 }
 0x1ba   :  { %995 = vadd.xlane.f32.xlu0 %v974_v36 }
 0x1bd   :  { %v901_v61 = vpop.xlane.xlu0 %900 }
 0x1be   :  { %v938_v25 = vmul.f32 %v2297_v62, %v901_v61 }
 0x1c0   :  { %v2331_v50 = vsub.f32 %v2153_v26, %v938_v25 }
 0x1c2   :  { %v970_v1 = vmul.f32 %v2331_v50, %v2331_v50 }
 0x1c4   :  { %987 = vadd.xlane.f32.xlu2 %v970_v1 }
 0x1c7   :  { %v903_v15 = vpop.xlane.xlu1 %902 }
 0x1c8   :  { %v939_v3 = vmul.f32 %v2297_v62, %v903_v15 }
 0x1ca   :  { %v2337_v4 = vsub.f32 %v2185_v56, %v939_v3 }
 0x1cc   :  { %v971_v42 = vmul.f32 %v2337_v4, %v2337_v4 }
 0x1ce   :  { %989 = vadd.xlane.f32.xlu0 %v971_v42 }
 0x1d1   :  { %v917_v41 = vpop.xlane.xlu0 %916 }
 0x1d2   :  { %v946_v31 = vmul.f32 %v2297_v62, %v917_v41  ;;  %v921_v9 = vpop.xlane.xlu2 %920 }
 0x1d3   :  { %v948_v26 = vmul.f32 %v2297_v62, %v921_v9 }
 0x1d4   :  { %v2344_v19 = vsub.f32 %v2215_v40, %v946_v31 }
 0x1d5   :  { %v2347_v55 = vsub.f32 %v2221_v27, %v948_v26 }
 0x1d6   :  { %v978_v56 = vmul.f32 %v2344_v19, %v2344_v19 }
 0x1d7   :  { %v980_v44 = vmul.f32 %v2347_v55, %v2347_v55 }
 0x1d8   :  { %1003 = vadd.xlane.f32.xlu1 %v978_v56 }
 0x1d9   :  { %1007 = vadd.xlane.f32.xlu0 %v980_v44 }
 0x1dc   :  { %v919_v35 = vpop.xlane.xlu1 %918 }
 0x1dd   :  { %v947_v32 = vmul.f32 %v2297_v62, %v919_v35  ;;  %v911_v30 = vpop.xlane.xlu0 %910 }
 0x1de   :  { %v943_v23 = vmul.f32 %v2297_v62, %v911_v30 }
 0x1df   :  { %v2356_v40 = vsub.f32 %v2255_v54, %v947_v32 }
 0x1e0   :  { %v2359_v27 = vsub.f32 %v2257_v8, %v943_v23 }
 0x1e1   :  { %v979_v37 = vmul.f32 %v2356_v40, %v2356_v40 }
 0x1e2   :  { %v975_v28 = vmul.f32 %v2359_v27, %v2359_v27 }
 0x1e3   :  { %1005 = vadd.xlane.f32.xlu2 %v979_v37 }
 0x1e4   :  { %997 = vadd.xlane.f32.xlu1 %v975_v28 }
 0x1ea   :  { %v927_v38 = vpop.xlane.xlu2 %926 }
 0x1eb   :  { %v951_v45 = vmul.f32 %v2297_v62, %v927_v38 }
 0x1ed   :  { %v2367_v51 = vsub.f32 %v2280_v60, %v951_v45 }
 0x1ef   :  { %v905_v11 = vpop.xlane.xlu1 %904  ;;  %v983_v54 = vmul.f32 %v2367_v51, %v2367_v51 }
 0x1f0   :  { %v940_v8 = vmul.f32 %v2297_v62, %v905_v11 }
 0x1f1   :  { %1013 = vadd.xlane.f32.xlu0 %v983_v54 }
 0x1f2   :  { %v2373_v39 = vsub.f32 %v2286_v43, %v940_v8  ;;  %v929_v14 = vpop.xlane.xlu0 %928 }
 0x1f3   :  { %v952_v16 = vmul.f32 %v2297_v62, %v929_v14 }
 0x1f4   :  { %v972_v48 = vmul.f32 %v2373_v39, %v2373_v39 }
 0x1f5   :  { %v2379_v60 = vsub.f32 %v2289_v2, %v952_v16  ;;  %v982_v2 = vmul.f32 %v2391_v53, %v2391_v53 }
 0x1f6   :  { %991 = vadd.xlane.f32.xlu1 %v972_v48  ;;  %v2412_v48 = vld [vmem:[%s2564_s3] ss:$0 sm:$0xff] }
 0x1f7   :  { %v984_v24 = vmul.f32 %v2379_v60, %v2379_v60 }
 0x1fb   :  { %v913_v13 = vpop.xlane.xlu1 %912 }
 0x1fc   :  { %v944_v21 = vmul.f32 %v2297_v62, %v913_v13 }
 0x1fe   :  { %1015 = vadd.xlane.f32.xlu1 %v984_v24  ;;  %v2385_v43 = vsub.f32 %v2294_v20, %v944_v21 }
 0x200   :  { %v976_v22 = vmul.f32 %v2385_v43, %v2385_v43 }
 0x202   :  { %999 = vadd.xlane.f32.xlu2 %v976_v22 }
 0x20a   :  { %1011 = vadd.xlane.f32.xlu2 %v982_v2 }
 0x210   :  { %v994_v59 = vpop.xlane.xlu2 %993 }
 0x211   :  { %v1021_v0 = vmul.f32 %v994_v59, %v2297_v62 }
 0x213   :  { %v1037_v46 = vadd.f32 1e-05, %v1021_v0 }
 0x215   :  { %1489 = vrsqrt.f32 %v1037_v46  ;;  %vm1095_vm2 = vweird.f32 %v1037_v46 }
 0x21b   :  { %v986_v17 = vpop.xlane.xlu1 %985  ;;  %v1490_v49 = vpop.eup %1489 }
 0x21c   :  { %v1017_v20 = vmul.f32 %v986_v17, %v2297_v62  ;;  %v1090_v12 = vmul.f32 %v1490_v49, %v1037_v46  ;;  %vm1096_vm1 = vweird.f32 %v1490_v49 }
 0x21d   :  { %vm1097_vm4 = vmor %vm1095_vm2, %vm1096_vm1 }
 0x21e   :  { %v1033_v18 = vadd.f32 1e-05, %v1017_v20  ;;  %v1091_v7 = vmul.f32 %v1490_v49, %v1090_v12 }
 0x220   :  { %1491 = vrsqrt.f32 %v1033_v18  ;;  %v1002_v47 = vpop.xlane.xlu0 %1001  ;;  %v1092_v3 = vmul.f32 0.5, %v1091_v7  ;;  %vm1055_vm5 = vweird.f32 %v1033_v18 }
 0x221   :  { %v1025_v57 = vmul.f32 %v1002_v47, %v2297_v62 }
 0x222   :  { %v1093_v9 = vsub.f32 1.5, %v1092_v3 }
 0x223   :  { %v2398_v36 = vadd.f32 1e-05, %v1025_v57  ;;  %v2405_v30 = vpop.xlane.xlu1 %1009 }
 0x224   :  { %v1094_v35 = vmul.f32 %v1490_v49, %v1093_v9 }
 0x225   :  { %1493 = vrsqrt.f32 %v2398_v36  ;;  %vm1135_vm14 = vweird.f32 %v2398_v36 }
 0x226   :  { %v1492_v34 = vpop.eup %1491  ;;  %v1098_v45 = vsel %vm1097_vm4, %v1490_v49, %v1094_v35 }
 0x227   :  { %v1050_v63 = vmul.f32 %v1492_v34, %v1033_v18  ;;  %vm1056_vm3 = vweird.f32 %v1492_v34  ;;  %v1213_v13 = vmul.f32 %v1098_v45, %v2301_v5  ;;  %v2422_v18 = vld [vmem:[%s2565_s4] ss:$0 sm:$0xff]  ;;  %s1606_s4 = smov [#allocation7]  }
 0x228   :  { %vm1057_vm6 = vmor %vm1055_vm5, %vm1056_vm3  ;;  %s1301_s9 = sshll.u32 %s1606_s4, 4  ;;  %s1302_s9 = int_to_ptr.vmem [resolvable:$true] %s1301_s9 }
 0x229   :  { %v1051_v61 = vmul.f32 %v1492_v34, %v1050_v63  ;;  %v1233_v46 = vmul.f32 %v2412_v48, %v1213_v13 }
 0x22b   :  { %v1052_v31 = vmul.f32 0.5, %v1051_v61  ;;  %v2403_v56 = vpop.eup %1493 }
 0x22c   :  { %v1130_v11 = vmul.f32 %v2403_v56, %v2398_v36  ;;  %vm1136_vm13 = vweird.f32 %v2403_v56 }
 0x22d   :  { %v996_v52 = vpop.xlane.xlu0 %995  ;;  %v1053_v26 = vsub.f32 1.5, %v1052_v31  ;;  %vm1137_vm15 = vmor %vm1135_vm14, %vm1136_vm13 }
 0x22e   :  { %v1022_v1 = vmul.f32 %v996_v52, %v2297_v62  ;;  %v1131_v21 = vmul.f32 %v2403_v56, %v1130_v11  ;;  %v1253_v52 = vadd.f32 %v2422_v18, %v1233_v46 }
 0x22f   :  { %v1054_v37 = vmul.f32 %v1492_v34, %v1053_v26 }
 0x230   :  { %v1038_v42 = vadd.f32 1e-05, %v1022_v1  ;;  %v1132_v47 = vmul.f32 0.5, %v1131_v21 }
 0x231   :  { %v1058_v14 = vsel %vm1057_vm6, %v1492_v34, %v1054_v37 }
 0x232   :  { %1495 = vrsqrt.f32 %v1038_v42  ;;  %v1209_v2 = vmul.f32 %v1058_v14, %v2307_v29  ;;  %vm1105_vm9 = vweird.f32 %v1038_v42  ;;  %v1133_v61 = vsub.f32 1.5, %v1132_v47 }
 0x234   :  { %v1229_v12 = vmul.f32 %v2412_v48, %v1209_v2  ;;  %v1134_v26 = vmul.f32 %v2403_v56, %v1133_v61 }
 0x237   :  { %v988_v25 = vpop.xlane.xlu2 %987 }
 0x238   :  { %v1018_v15 = vmul.f32 %v988_v25, %v2297_v62  ;;  %v1496_v44 = vpop.eup %1495 }
 0x239   :  { %v1100_v23 = vmul.f32 %v1496_v44, %v1038_v42  ;;  %vm1106_vm7 = vweird.f32 %v1496_v44 }
 0x23a   :  { %v1034_v41 = vadd.f32 1e-05, %v1018_v15  ;;  %vm1107_vm11 = vmor %vm1105_vm9, %vm1106_vm7  ;;  %v1249_v15 = vadd.f32 %v2422_v18, %v1229_v12 }
 0x23b   :  { %v1101_v38 = vmul.f32 %v1496_v44, %v1100_v23 }
 0x23c   :  { %1497 = vrsqrt.f32 %v1034_v41  ;;  %vm1065_vm10 = vweird.f32 %v1034_v41 }
 0x23d   :  { %v1102_v8 = vmul.f32 0.5, %v1101_v38  ;;  %v1138_v38 = vsel %vm1137_vm15, %v2403_v56, %v1134_v26 }
 0x23f   :  { %v1103_v24 = vsub.f32 1.5, %v1102_v8 }
 0x241   :  { %v990_v22 = vpop.xlane.xlu0 %989  ;;  %v1104_v59 = vmul.f32 %v1496_v44, %v1103_v24 }
 0x242   :  { %v1498_v32 = vpop.eup %1497 }
 0x243   :  { %v1060_v28 = vmul.f32 %v1498_v32, %v1034_v41  ;;  %vm1066_vm8 = vweird.f32 %v1498_v32  ;;  %v1108_v5 = vsel %vm1107_vm11, %v1496_v44, %v1104_v59 }
 0x244   :  { %vm1067_vm12 = vmor %vm1065_vm10, %vm1066_vm8  ;;  %v1214_v29 = vmul.f32 %v1108_v5, %v2325_v6 }
 0x245   :  { %v1061_v54 = vmul.f32 %v1498_v32, %v1060_v28 }
 0x246   :  { %v1234_v63 = vmul.f32 %v2412_v48, %v1214_v29 }
 0x247   :  { %v1062_v16 = vmul.f32 0.5, %v1061_v54  ;;  %v1217_v54 = vmul.f32 %v1138_v38, %v2313_v33 }
 0x248   :  { %v1254_v25 = vadd.f32 %v2422_v18, %v1234_v63 }
 0x249   :  { %v1063_v58 = vsub.f32 1.5, %v1062_v16  ;;  %v1237_v21 = vmul.f32 %v2412_v48, %v1217_v54 }
 0x24a   :  { %v1386_v42 = vpack.c.bf16 %v1254_v25, %v1253_v52 }
 0x24b   :  { %v1004_v17 = vpop.xlane.xlu1 %1003  ;;  %v1064_v0 = vmul.f32 %v1498_v32, %v1063_v58  ;;  %v1257_v46 = vadd.f32 %v2422_v18, %v1237_v21 }
 0x24c   :  { %v1026_v20 = vmul.f32 %v1004_v17, %v2297_v62  ;;  %v1008_v1 = vpop.xlane.xlu0 %1007  ;;  %1414 = vst [vmem:[#allocation7 + $0x10] sm:$0xff] %v1386_v42  }
 0x24d   :  { %v1068_v49 = vsel %vm1067_vm12, %v1498_v32, %v1064_v0  ;;  %v1028_v3 = vmul.f32 %v1008_v1, %v2297_v62 }
 0x24e   :  { %v1042_v34 = vadd.f32 1e-05, %v1026_v20  ;;  %v1210_v57 = vmul.f32 %v1068_v49, %v2331_v50  ;;  %v1019_v50 = vmul.f32 %v990_v22, %v2297_v62 }
 0x24f   :  { %v1044_v31 = vadd.f32 1e-05, %v1028_v3 }
 0x250   :  { %1499 = vrsqrt.f32 %v1042_v34  ;;  %v1230_v7 = vmul.f32 %v2412_v48, %v1210_v57  ;;  %v2439_v23 = vadd.f32 1e-05, %v1019_v50  ;;  %vm1145_vm1 = vweird.f32 %v1042_v34 }
 0x251   :  { %1501 = vrsqrt.f32 %v1044_v31  ;;  %vm1165_vm4 = vweird.f32 %v1044_v31 }
 0x252   :  { %v1250_v6 = vadd.f32 %v2422_v18, %v1230_v7  ;;  %vm1075_vm10 = vweird.f32 %v2439_v23 }
 0x254   :  { %v1376_v41 = vpack.c.bf16 %v1250_v6, %v1249_v15 }
 0x256   :  { %v1500_v9 = vpop.eup %1499  ;;  %v1006_v44 = vpop.xlane.xlu2 %1005  ;;  %1377 = vst [vmem:[#allocation7] sm:$0xff] %v1376_v41  }
 0x257   :  { %v1140_v35 = vmul.f32 %v1500_v9, %v1042_v34  ;;  %v1027_v32 = vmul.f32 %v1006_v44, %v2297_v62  ;;  %v1502_v11 = vpop.eup %1501  ;;  %vm1146_vm0 = vweird.f32 %v1500_v9  ;;  %v998_v14 = vpop.xlane.xlu1 %997 }
 0x258   :  { %v1160_v16 = vmul.f32 %v1502_v11, %v1044_v31  ;;  %vm1147_vm2 = vmor %vm1145_vm1, %vm1146_vm0  ;;  %v1023_v56 = vmul.f32 %v998_v14, %v2297_v62  ;;  %vm1166_vm3 = vweird.f32 %v1502_v11 }
 0x259   :  { %v1141_v37 = vmul.f32 %v1500_v9, %v1140_v35  ;;  %v1043_v28 = vadd.f32 1e-05, %v1027_v32  ;;  %vm1167_vm6 = vmor %vm1165_vm4, %vm1166_vm3 }
 0x25a   :  { %v1161_v36 = vmul.f32 %v1502_v11, %v1160_v16  ;;  %v2453_v47 = vadd.f32 1e-05, %v1023_v56 }
 0x25b   :  { %v1142_v45 = vmul.f32 0.5, %v1141_v37  ;;  %1503 = vrsqrt.f32 %v1043_v28  ;;  %vm1155_vm7 = vweird.f32 %v1043_v28 }
 0x25c   :  { %1505 = vrsqrt.f32 %v2439_v23  ;;  %v1162_v33 = vmul.f32 0.5, %v1161_v36  ;;  %vm1115_vm3 = vweird.f32 %v2453_v47 }
 0x25d   :  { %v1143_v8 = vsub.f32 1.5, %v1142_v45  ;;  %1507 = vrsqrt.f32 %v2453_v47 }
 0x25e   :  { %v1163_v20 = vsub.f32 1.5, %v1162_v33 }
 0x25f   :  { %v1144_v13 = vmul.f32 %v1500_v9, %v1143_v8 }
 0x260   :  { %v1164_v34 = vmul.f32 %v1502_v11, %v1163_v20 }
 0x261   :  { %v1504_v24 = vpop.eup %1503  ;;  %v1148_v58 = vsel %vm1147_vm2, %v1500_v9, %v1144_v13 }
 0x262   :  { %v2446_v22 = vpop.eup %1505  ;;  %v1218_v2 = vmul.f32 %v1148_v58, %v2344_v19  ;;  %v1150_v59 = vmul.f32 %v1504_v24, %v1043_v28  ;;  %v1029_v19 = vmul.f32 %v2405_v30, %v2297_v62  ;;  %vm1156_vm5 = vweird.f32 %v1504_v24 }
 0x263   :  { %v1070_v5 = vmul.f32 %v2446_v22, %v2439_v23  ;;  %v1168_v7 = vsel %vm1167_vm6, %v1502_v11, %v1164_v34  ;;  %vm1157_vm8 = vmor %vm1155_vm7, %vm1156_vm5  ;;  %v2471_v9 = vpop.eup %1507  ;;  %vm1076_vm9 = vweird.f32 %v2446_v22 }
 0x264   :  { %v1238_v17 = vmul.f32 %v2412_v48, %v1218_v2  ;;  %v1151_v0 = vmul.f32 %v1504_v24, %v1150_v59  ;;  %v1014_v12 = vpop.xlane.xlu0 %1013  ;;  %v1220_v25 = vmul.f32 %v1168_v7, %v2347_v55  ;;  %v2465_v3 = vadd.f32 1e-05, %v1029_v19  ;;  %vm1077_vm11 = vmor %vm1075_vm10, %vm1076_vm9 }
 0x265   :  { %v1031_v52 = vmul.f32 %v1014_v12, %v2297_v62  ;;  %v1071_v61 = vmul.f32 %v2446_v22, %v1070_v5  ;;  %v1110_v38 = vmul.f32 %v2471_v9, %v2453_v47  ;;  %vm1116_vm2 = vweird.f32 %v2471_v9 }
 0x266   :  { %v1258_v49 = vadd.f32 %v2422_v18, %v1238_v17  ;;  %v1152_v29 = vmul.f32 0.5, %v1151_v0  ;;  %v1240_v42 = vmul.f32 %v2412_v48, %v1220_v25  ;;  %vm2525_vm5 = vmor %vm1115_vm3, %vm1116_vm2 }
 0x267   :  { %v2463_v6 = vadd.f32 1e-05, %v1031_v52  ;;  %v1072_v31 = vmul.f32 0.5, %v1071_v61 }
 0x268   :  { %v1396_v57 = vpack.c.bf16 %v1258_v49, %v1257_v46  ;;  %v1153_v63 = vsub.f32 1.5, %v1152_v29  ;;  %v1260_v44 = vadd.f32 %v2422_v18, %v1240_v42 }
 0x269   :  { %v992_v1 = vpop.xlane.xlu1 %991  ;;  %1509 = vrsqrt.f32 %v2463_v6  ;;  %v1073_v35 = vsub.f32 1.5, %v1072_v31  ;;  %vm1195_vm0 = vweird.f32 %v2463_v6 }
 0x26a   :  { %1416 = vst [vmem:[#allocation7 + $0x20] sm:$0xff] %v1396_v57   ;;  %v1154_v15 = vmul.f32 %v1504_v24, %v1153_v63  ;;  %v1020_v30 = vmul.f32 %v992_v1, %v2297_v62 }
 0x26b   :  { %v1074_v16 = vmul.f32 %v2446_v22, %v1073_v35 }
 0x26c   :  { %v1158_v50 = vsel %vm1157_vm8, %v1504_v24, %v1154_v15  ;;  %v1036_v41 = vadd.f32 1e-05, %v1020_v30  ;;  %v1111_v24 = vmul.f32 %v2471_v9, %v1110_v38 }
 0x26d   :  { %v1219_v55 = vmul.f32 %v1158_v50, %v2356_v40  ;;  %v1078_v33 = vsel %vm1077_vm11, %v2446_v22, %v1074_v16  ;;  %vm1175_vm11 = vweird.f32 %v2465_v3 }
 0x26e   :  { %1511 = vrsqrt.f32 %v1036_v41  ;;  %v1112_v46 = vmul.f32 0.5, %v1111_v24  ;;  %v1211_v29 = vmul.f32 %v1078_v33, %v2337_v4  ;;  %vm1085_vm13 = vweird.f32 %v1036_v41 }
 0x26f   :  { %1513 = vrsqrt.f32 %v2465_v3  ;;  %v1239_v26 = vmul.f32 %v2412_v48, %v1219_v55  ;;  %v2477_v28 = vpop.eup %1509 }
 0x270   :  { %v1190_v11 = vmul.f32 %v2477_v28, %v2463_v6  ;;  %vm1196_vm14 = vweird.f32 %v2477_v28  ;;  %v1113_v12 = vsub.f32 1.5, %v1112_v46  ;;  %v1231_v61 = vmul.f32 %v2412_v48, %v1211_v29 }
 0x271   :  { %v1259_v32 = vadd.f32 %v2422_v18, %v1239_v26  ;;  %v1016_v37 = vpop.xlane.xlu1 %1015  ;;  %vm2510_vm1 = vmor %vm1195_vm0, %vm1196_vm14 }
 0x272   :  { %v1032_v40 = vmul.f32 %v1016_v37, %v2297_v62  ;;  %v1191_v36 = vmul.f32 %v2477_v28, %v1190_v11  ;;  %v1114_v6 = vmul.f32 %v2471_v9, %v1113_v12  ;;  %v1251_v31 = vadd.f32 %v2422_v18, %v1231_v61 }
 0x273   :  { %v1401_v45 = vpack.c.bf16 %v1260_v44, %v1259_v32 }
 0x274   :  { %v1512_v54 = vpop.eup %1511  ;;  %v2484_v8 = vadd.f32 1e-05, %v1032_v40  ;;  %v1192_v56 = vmul.f32 0.5, %v1191_v36  ;;  %v1118_v47 = vsel %vm2525_vm5, %v2471_v9, %v1114_v6 }
 0x275   :  { %v2486_v14 = vpop.eup %1513  ;;  %1417 = vst [vmem:[#allocation7 + $0x28] sm:$0xff] %v1401_v45   ;;  %v1080_v13 = vmul.f32 %v1512_v54, %v1036_v41  ;;  %v1000_v21 = vpop.xlane.xlu2 %999  ;;  %vm1086_vm12 = vweird.f32 %v1512_v54 }
 0x276   :  { %1515 = vrsqrt.f32 %v2484_v8  ;;  %v1024_v2 = vmul.f32 %v1000_v21, %v2297_v62  ;;  %v1170_v59 = vmul.f32 %v2486_v14, %v2465_v3  ;;  %v1193_v0 = vsub.f32 1.5, %v1192_v56  ;;  %vm1087_vm15 = vmor %vm1085_vm13, %vm1086_vm12 }
 0x277   :  { %v1081_v58 = vmul.f32 %v1512_v54, %v1080_v13  ;;  %vm1205_vm6 = vweird.f32 %v2484_v8  ;;  %vm1176_vm9 = vweird.f32 %v2486_v14 }
 0x278   :  { %v2498_v20 = vadd.f32 1e-05, %v1024_v2  ;;  %v1171_v49 = vmul.f32 %v2486_v14, %v1170_v59  ;;  %v1194_v19 = vmul.f32 %v2477_v28, %v1193_v0  ;;  %vm1177_vm13 = vmor %vm1175_vm11, %vm1176_vm9 }
 0x279   :  { %v1082_v17 = vmul.f32 0.5, %v1081_v58 }
 0x27a   :  { %1517 = vrsqrt.f32 %v2498_v20  ;;  %v1172_v15 = vmul.f32 0.5, %v1171_v49  ;;  %v1198_v30 = vsel %vm2510_vm1, %v2477_v28, %v1194_v19  ;;  %vm1125_vm10 = vweird.f32 %v2498_v20 }
 0x27b   :  { %v1083_v5 = vsub.f32 1.5, %v1082_v17  ;;  %v1223_v26 = vmul.f32 %v1198_v30, %v2367_v51 }
 0x27c   :  { %v1516_v23 = vpop.eup %1515  ;;  %v1173_v35 = vsub.f32 1.5, %v1172_v15 }
 0x27d   :  { %v1084_v34 = vmul.f32 %v1512_v54, %v1083_v5  ;;  %v1200_v22 = vmul.f32 %v1516_v23, %v2484_v8  ;;  %v1012_v57 = vpop.xlane.xlu2 %1011  ;;  %vm1206_vm4 = vweird.f32 %v1516_v23  ;;  %v1243_v51 = vmul.f32 %v2412_v48, %v1223_v26 }
 0x27e   :  { %v1030_v52 = vmul.f32 %v1012_v57, %v2297_v62  ;;  %vm1207_vm7 = vmor %vm1205_vm6, %vm1206_vm4  ;;  %v1174_v16 = vmul.f32 %v2486_v14, %v1173_v35  ;;  %v1215_v8 = vmul.f32 %v1118_v47, %v2359_v27 }
 0x27f   :  { %v1088_v63 = vsel %vm1087_vm15, %v1512_v54, %v1084_v34  ;;  %v1201_v7 = vmul.f32 %v1516_v23, %v1200_v22  ;;  %v1263_v24 = vadd.f32 %v2422_v18, %v1243_v51 }
 0x280   :  { %v1212_v4 = vmul.f32 %v1088_v63, %v2373_v39  ;;  %v1518_v1 = vpop.eup %1517  ;;  %v1046_v50 = vadd.f32 1e-05, %v1030_v52  ;;  %v1235_v56 = vmul.f32 %v2412_v48, %v1215_v8  ;;  %v1178_v2 = vsel %vm1177_vm13, %v2486_v14, %v1174_v16 }
 0x281   :  { %v1202_v42 = vmul.f32 0.5, %v1201_v7  ;;  %v1120_v39 = vmul.f32 %v1518_v1, %v2498_v20  ;;  %vm1126_vm8 = vweird.f32 %v1518_v1  ;;  %v1221_v0 = vmul.f32 %v1178_v2, %v2319_v10 }
 0x282   :  { %v1232_v62 = vmul.f32 %v2412_v48, %v1212_v4  ;;  %1519 = vrsqrt.f32 %v1046_v50  ;;  %vm1127_vm12 = vmor %vm1125_vm10, %vm1126_vm8  ;;  %v1255_v20 = vadd.f32 %v2422_v18, %v1235_v56  ;;  %vm1185_vm15 = vweird.f32 %v1046_v50 }
 0x283   :  { %v1203_v41 = vsub.f32 1.5, %v1202_v42  ;;  %v1121_v44 = vmul.f32 %v1518_v1, %v1120_v39  ;;  %v1241_v14 = vmul.f32 %v2412_v48, %v1221_v0 }
 0x284   :  { %v1252_v55 = vadd.f32 %v2422_v18, %v1232_v62 }
 0x285   :  { %v1204_v37 = vmul.f32 %v1516_v23, %v1203_v41  ;;  %v1122_v38 = vmul.f32 0.5, %v1121_v44  ;;  %v1261_v10 = vadd.f32 %v2422_v18, %v1241_v14 }
 0x286   :  { %v1381_v28 = vpack.c.bf16 %v1252_v55, %v1251_v31 }
 0x287   :  { %v1208_v40 = vsel %vm1207_vm7, %v1516_v23, %v1204_v37  ;;  %v1123_v45 = vsub.f32 1.5, %v1122_v38 }
 0x288   :  { %1413 = vst [vmem:[#allocation7 + $0x8] sm:$0xff] %v1381_v28   ;;  %v1224_v11 = vmul.f32 %v1208_v40, %v2379_v60  ;;  %v1520_v54 = vpop.eup %1519 }
 0x289   :  { %v1124_v13 = vmul.f32 %v1518_v1, %v1123_v45  ;;  %v1180_v36 = vmul.f32 %v1520_v54, %v1046_v50  ;;  %vm1186_vm14 = vweird.f32 %v1520_v54 }
 0x28a   :  { %v1244_v9 = vmul.f32 %v2412_v48, %v1224_v11  ;;  %vm1187_vm0 = vmor %vm1185_vm15, %vm1186_vm14 }
 0x28b   :  { %v1128_v21 = vsel %vm1127_vm12, %v1518_v1, %v1124_v13  ;;  %v1181_v58 = vmul.f32 %v1520_v54, %v1180_v36 }
 0x28c   :  { %v1264_v60 = vadd.f32 %v2422_v18, %v1244_v9  ;;  %v1216_v27 = vmul.f32 %v1128_v21, %v2385_v43 }
 0x28d   :  { %v1182_v33 = vmul.f32 0.5, %v1181_v58 }
 0x28e   :  { %v1411_v59 = vpack.c.bf16 %v1264_v60, %v1263_v24  ;;  %v1236_v17 = vmul.f32 %v2412_v48, %v1216_v27 }
 0x28f   :  { %v1183_v3 = vsub.f32 1.5, %v1182_v33 }
 0x290   :  { %1419 = vst [vmem:[#allocation7 + $0x38] sm:$0xff] %v1411_v59   ;;  %v1256_v46 = vadd.f32 %v2422_v18, %v1236_v17 }
 0x291   :  { %v1184_v5 = vmul.f32 %v1520_v54, %v1183_v3 }
 0x292   :  { %v1391_v23 = vpack.c.bf16 %v1256_v46, %v1255_v20 }
 0x293   :  { %v1188_v43 = vsel %vm1187_vm0, %v1520_v54, %v1184_v5 }
 0x294   :  { %1415 = vst [vmem:[#allocation7 + $0x18] sm:$0xff] %v1391_v23   ;;  %v1222_v49 = vmul.f32 %v1188_v43, %v2391_v53 }
 0x296   :  { %v1242_v29 = vmul.f32 %v2412_v48, %v1222_v49 }
 0x298   :  { %v1262_v34 = vadd.f32 %v2422_v18, %v1242_v29 }
 0x29a   :  { %v1406_v19 = vpack.c.bf16 %v1262_v34, %v1261_v10 }
 0x29c   :  { %1418 = vst [vmem:[#allocation7 + $0x30] sm:$0xff] %v1406_v19  }
 0x29d   :  { %1309 = dma.vmem_to_hbm [thread:$0]  %s1302_s9, 1024, %s1304_s12, [#allocation4], %s1603_s30, %s1603_s30, %s1604_s6  }
 0x29e   :  { %1597 = dma.done.wait [#allocation4], 1024  }
 0x29f   :  { %1598 = vsyncadd [#allocation4], 4294966272 }
 0x2a0   :  { %1314 = vsyncpa [#allocation3], 1 }
 0x2a1   :  { %1315 = vsyncpa [#allocation6], 1 }
 0x2a2   :  { %1316 = vsyncpa [#allocation4], 1 }

</bundles_post_ra>
